<compile_context>
chip_gen: v7x
topology: tpu7x:2x2x1
jax: 0.10.0
libtpu: 0.0.40
codegen_flags: <defaults>
</compile_context>

<pallas_src>
import jax
import jax.numpy as jnp
from jax import lax
from jax.experimental import pallas as pl
from jax.experimental.pallas import tpu as pltpu


def fused_recurrent_kernel(x_ref, wcat_ref, sb_ref, o_ref, xp_ref):
    """Fused forward for Bn images.

    x_ref:    (Bn, H, WC)    bf16  images, channels innermost (lane-dense rows)
    wcat_ref: (WC, 3*WC)     bf16  banded conv weights; the 3 dy taps are
                                   concatenated along columns; width zero
                                   padding is encoded by the band structure
    sb_ref:   (2, WC)        f32   row 0 = folded BN scale, row 1 = bias
    o_ref:    (Bn, H, WC)    f32   output
    xp_ref:   (Bn*(H+2), WC) f32   scratch: stacked height-padded input slabs
    """
    Bn, H, WC = x_ref.shape
    Hp = H + 2

    # Zero halo rows (top/bottom zero padding of each image's slab slot).
    # Scratch is per-core, so re-zero every grid step (cheap, and stays
    # correct under dimension_semantics="parallel").
    zrow = jnp.zeros((1, WC), xp_ref.dtype)
    for b in range(Bn):
        base = b * Hp
        xp_ref[base:base + 1, :] = zrow
        xp_ref[base + H + 1:base + H + 2, :] = zrow

    # Hoisted once (JAX does not CSE broadcast_in_dim).
    scale_full = jnp.broadcast_to(sb_ref[0:1, :], (H, WC))    # f32
    bias_full = jnp.broadcast_to(sb_ref[1:2, :], (H, WC))     # f32
    wcat = wcat_ref[...]                                      # (WC, 3*WC) bf16

    x_f32 = x_ref[...].astype(jnp.float32)                    # (Bn, H, WC)

    def conv_bn_relu(rows):
        # rows: list of Bn (H, WC) f32 images to convolve.
        for b in range(Bn):                                   # static unroll
            base = b * Hp
            xp_ref[base + 1:base + 1 + H, :] = rows[b]
        # One wide MXU matmul for all 3 taps and all Bn images:
        #   (Bn*(H+2), WC) @ (WC, 3*WC), bf16 operands, f32 accumulate.
        r = jnp.dot(xp_ref[...].astype(jnp.bfloat16), wcat,
                    preferred_element_type=jnp.float32)
        outs = []
        for b in range(Bn):
            base = b * Hp
            acc = (r[base:base + H, 0 * WC:1 * WC]
                   + r[base + 1:base + 1 + H, 1 * WC:2 * WC]
                   + r[base + 2:base + 2 + H, 2 * WC:3 * WC])
            # BatchNorm (folded scale/bias) + ReLU epilogue in f32.
            outs.append(jnp.maximum(acc * scale_full + bias_full, 0.0))
        return outs

    y1 = conv_bn_relu([x_f32[b] for b in range(Bn)])           # layer(x)
    y2 = conv_bn_relu([x_f32[b] + y1[b] for b in range(Bn)])   # layer(x + y1)
    for b in range(Bn):
        o_ref[b] = y2[b].astype(o_ref.dtype)


def _build_cat_band_weights(w_hwio, W, dtype=jnp.bfloat16):
    """(WC, 3*WC) banded weight; column block dy satisfies
    B[dy][w_in*C+ci, w_out*C+co] = w[dy, dx, ci, co] with dx = w_in - w_out + 1;
    out-of-range width taps are absent (== zero padding along W)."""
    C = w_hwio.shape[2]
    bands = []
    for dy in range(3):
        acc = jnp.zeros((W, C, W, C), jnp.float32)
        for dx in range(3):
            shift = jnp.eye(W, k=1 - dx, dtype=jnp.float32)   # S[w_in, w_out]
            acc = acc + jnp.einsum("ab,ij->aibj", shift, w_hwio[dy, dx])
        bands.append(acc.reshape(W * C, W * C))
    return jnp.concatenate(bands, axis=1).astype(dtype)


def prepare_params(w_oihw, gamma, beta, run_mean, run_var, W, eps=1e-5):
    """One-time parameter prep (hoist out of the hot path / let jit const-fold
    it): banded conv weights + folded inference-mode BatchNorm scale/bias."""
    w_hwio = jnp.transpose(w_oihw, (2, 3, 1, 0))              # OIHW -> HWIO
    wcat = _build_cat_band_weights(w_hwio, W)                 # (WC, 3WC) bf16
    scale = gamma / jnp.sqrt(run_var + eps)
    bias = beta - run_mean * scale
    sb = jnp.stack([jnp.tile(scale, W),
                    jnp.tile(bias, W)]).astype(jnp.float32)   # (2, W*C)
    return wcat, sb


def _pick_batch_tile(N, H, target_m=256):
    """Images per grid step: fill the stacked-slab matmul M dim to ~target_m
    rows (v6e/v7x MXU height) without exceeding N; must divide N."""
    bn = max(1, min(N, target_m // (H + 2)))
    while N % bn:
        bn -= 1
    return bn


def _pallas_forward(x_lane, wcat, sb, bn, single_buffer_weights):
    N, H, WC = x_lane.shape

    def const_spec(shape):
        zeros = (0,) * len(shape)
        kwargs = {}
        if single_buffer_weights:
            # Grid-invariant operand: one buffer is enough (halves its VMEM).
            kwargs["pipeline_mode"] = pl.Buffered(1)
        return pl.BlockSpec(shape, lambda n: zeros, **kwargs)

    return pl.pallas_call(
        fused_recurrent_kernel,
        out_shape=jax.ShapeDtypeStruct((N, H, WC), jnp.float32),
        grid_spec=pltpu.PrefetchScalarGridSpec(
            num_scalar_prefetch=0,
            grid=(N // bn,),
            in_specs=[
                pl.BlockSpec((bn, H, WC), lambda n: (n, 0, 0)),
                const_spec(wcat.shape),
                const_spec(sb.shape),
            ],
            out_specs=pl.BlockSpec((bn, H, WC), lambda n: (n, 0, 0)),
            scratch_shapes=[pltpu.VMEM((bn * (H + 2), WC), jnp.float32)],
        ),
        compiler_params=pltpu.CompilerParams(
            dimension_semantics=("parallel",)),
    )(x_lane, wcat, sb)


def recurrent_forward_lane(x_lane, wcat, sb):
    """x_lane: (N, H, W*C) lane-dense activations (bf16 recommended)."""
    N, H, _ = x_lane.shape
    bn = _pick_batch_tile(N, H)
    try:
        return _pallas_forward(x_lane, wcat, sb, bn, single_buffer_weights=True)
    except Exception:
        # pl.Buffered(1) not supported by this jax -> default double buffering.
        return _pallas_forward(x_lane, wcat, sb, bn, single_buffer_weights=False)


def recurrent_layer_pallas_nhwc(x_nhwc, wcat, sb):
    """Preferred entry point: NHWC in/out, no transposes (reshape only)."""
    N, H, W, C = x_nhwc.shape
    x_lane = x_nhwc.reshape(N, H, W * C).astype(jnp.bfloat16)
    out = recurrent_forward_lane(x_lane, wcat, sb)
    return out.reshape(N, H, W, C)


def recurrent_layer_pallas(x_nchw, wcat, sb):
    """PyTorch-parity adapter (NCHW in/out).  Each transpose is a full extra
    HBM pass; production callers should stay NHWC and use the _nhwc entry."""
    x_nhwc = jnp.transpose(x_nchw, (0, 2, 3, 1))
    out = recurrent_layer_pallas_nhwc(x_nhwc, wcat, sb)
    return jnp.transpose(out, (0, 3, 1, 2))


def _reference(x_nchw, w_oihw, gamma, beta, run_mean, run_var, eps=1e-5):
    """Pure-JAX f32 reference (NHWC conv) for correctness check."""
    x = jnp.transpose(x_nchw, (0, 2, 3, 1))
    w = jnp.transpose(w_oihw, (2, 3, 1, 0))
    scale = gamma / jnp.sqrt(run_var + eps)
    bias = beta - run_mean * scale

    def layer(inp):
        c = lax.conv_general_dilated(
            inp, w, window_strides=(1, 1), padding="SAME",
            dimension_numbers=("NHWC", "HWIO", "NHWC"))
        return jnp.maximum(c * scale + bias, 0.0)

    y = layer(x + layer(x))
    return jnp.transpose(y, (0, 3, 1, 2))


if __name__ == "__main__":
    key = jax.random.PRNGKey(0)
    kx, kw, kg, kb, km, kv = jax.random.split(key, 6)

    # C=8, W=16 -> W*C = 128: one full lane-tile per image row.
    N, C, H, W = 2, 8, 16, 16
    x = jax.random.normal(kx, (N, C, H, W), dtype=jnp.float32)

    # Deterministic synthetic parameters (nn.Conv2d / nn.BatchNorm2d shapes).
    w_oihw = jax.random.normal(kw, (C, C, 3, 3), dtype=jnp.float32) * 0.1
    gamma = 1.0 + 0.1 * jax.random.normal(kg, (C,), dtype=jnp.float32)
    beta = 0.1 * jax.random.normal(kb, (C,), dtype=jnp.float32)
    run_mean = 0.1 * jax.random.normal(km, (C,), dtype=jnp.float32)
    run_var = jnp.abs(jax.random.normal(kv, (C,), dtype=jnp.float32)) + 0.5

    # One-time parameter prep, hoisted out of the hot path.
    wcat, sb = prepare_params(w_oihw, gamma, beta, run_mean, run_var, W)

    out = recurrent_layer_pallas(x, wcat, sb)
    out = jax.block_until_ready(out)

    ref = _reference(x, w_oihw, gamma, beta, run_mean, run_var)
    assert out.shape == (N, C, H, W)
    # bf16 activations/weights on the MXU (f32 accumulate) -> relaxed tol.
    err = float(jnp.max(jnp.abs(out - ref)))
    assert jnp.allclose(out, ref, atol=5e-2, rtol=5e-2), err

    print("KERNEL_OK")
</pallas_src>

<mosaic_0001>
module attributes {stable_mosaic.version = 11 : i64} {
  func.func @fused_recurrent_kernel(%arg0: i32, %arg1: memref<2x16x128xbf16, #tpu.memory_space<vmem>>, %arg2: memref<128x384xbf16, #tpu.memory_space<vmem>>, %arg3: memref<2x128xf32, #tpu.memory_space<vmem>>, %arg4: memref<2x16x128xf32, #tpu.memory_space<vmem>>, %arg5: memref<36x128xf32, #tpu.memory_space<vmem>>) attributes {dimension_semantics = [#tpu.dimension_semantics<parallel>], iteration_bounds = array<i64: 1>, scalar_prefetch = 0 : i64, scratch_operands = 1 : i64, tpu.core_type = #tpu.core_type<tc>, window_params = [{transform_indices = @transform_0, window_bounds = array<i64: 2, 16, 128>}, {pipeline_mode = #tpu.pipeline_mode<synchronous>, transform_indices = @transform_1, window_bounds = array<i64: 128, 384>}, {pipeline_mode = #tpu.pipeline_mode<synchronous>, transform_indices = @transform_2, window_bounds = array<i64: 2, 128>}, {transform_indices = @transform_3, window_bounds = array<i64: 2, 16, 128>}]} {
    %cst = arith.constant 0.000000e+00 : f32
    %0 = vector.broadcast %cst : f32 to vector<1x128xf32>
    %c0 = arith.constant 0 : index
    %c0_0 = arith.constant 0 : index
    %1 = vector.load %arg5[%c0, %c0_0] : memref<36x128xf32, #tpu.memory_space<vmem>>, vector<1x128xf32>
    tpu.vector_store %arg5[%c0, %c0_0], %0 {strides = array<i32>} : memref<36x128xf32, #tpu.memory_space<vmem>>, vector<1x128xf32>,
    %c17 = arith.constant 17 : index
    %c0_1 = arith.constant 0 : index
    %2 = vector.load %arg5[%c17, %c0_1] : memref<36x128xf32, #tpu.memory_space<vmem>>, vector<1x128xf32>
    tpu.vector_store %arg5[%c17, %c0_1], %0 {strides = array<i32>} : memref<36x128xf32, #tpu.memory_space<vmem>>, vector<1x128xf32>,
    %c18 = arith.constant 18 : index
    %c0_2 = arith.constant 0 : index
    %3 = vector.load %arg5[%c18, %c0_2] : memref<36x128xf32, #tpu.memory_space<vmem>>, vector<1x128xf32>
    tpu.vector_store %arg5[%c18, %c0_2], %0 {strides = array<i32>} : memref<36x128xf32, #tpu.memory_space<vmem>>, vector<1x128xf32>,
    %c35 = arith.constant 35 : index
    %c0_3 = arith.constant 0 : index
    %4 = vector.load %arg5[%c35, %c0_3] : memref<36x128xf32, #tpu.memory_space<vmem>>, vector<1x128xf32>
    tpu.vector_store %arg5[%c35, %c0_3], %0 {strides = array<i32>} : memref<36x128xf32, #tpu.memory_space<vmem>>, vector<1x128xf32>,
    %c0_4 = arith.constant 0 : index
    %c0_5 = arith.constant 0 : index
    %5 = vector.load %arg3[%c0_4, %c0_5] : memref<2x128xf32, #tpu.memory_space<vmem>>, vector<1x128xf32>
    %6 = vector.shape_cast %5 : vector<1x128xf32> to vector<1x128xf32>
    %7 = vector.broadcast %6 : vector<1x128xf32> to vector<16x128xf32>
    %c1 = arith.constant 1 : index
    %c0_6 = arith.constant 0 : index
    %8 = vector.load %arg3[%c1, %c0_6] : memref<2x128xf32, #tpu.memory_space<vmem>>, vector<1x128xf32>
    %9 = vector.shape_cast %8 : vector<1x128xf32> to vector<1x128xf32>
    %10 = vector.broadcast %9 : vector<1x128xf32> to vector<16x128xf32>
    %c0_7 = arith.constant 0 : index
    %c0_8 = arith.constant 0 : index
    %11 = vector.load %arg2[%c0_7, %c0_8] : memref<128x384xbf16, #tpu.memory_space<vmem>>, vector<128x384xbf16>
    %c0_9 = arith.constant 0 : index
    %c0_10 = arith.constant 0 : index
    %c0_11 = arith.constant 0 : index
    %12 = vector.load %arg1[%c0_9, %c0_10, %c0_11] : memref<2x16x128xbf16, #tpu.memory_space<vmem>>, vector<2x16x128xbf16>
    %13 = arith.extf %12 : vector<2x16x128xbf16> to vector<2x16x128xf32>
    %14 = vector.extract_strided_slice %13 {offsets = [0, 0, 0], sizes = [1, 16, 128], strides = [1, 1, 1]} : vector<2x16x128xf32> to vector<1x16x128xf32>
    %15 = vector.shape_cast %14 : vector<1x16x128xf32> to vector<16x128xf32>
    %16 = vector.extract_strided_slice %13 {offsets = [1, 0, 0], sizes = [1, 16, 128], strides = [1, 1, 1]} : vector<2x16x128xf32> to vector<1x16x128xf32>
    %17 = vector.shape_cast %16 : vector<1x16x128xf32> to vector<16x128xf32>
    %c1_12 = arith.constant 1 : index
    %c0_13 = arith.constant 0 : index
    %18 = vector.load %arg5[%c1_12, %c0_13] : memref<36x128xf32, #tpu.memory_space<vmem>>, vector<16x128xf32>
    tpu.vector_store %arg5[%c1_12, %c0_13], %15 {strides = array<i32>} : memref<36x128xf32, #tpu.memory_space<vmem>>, vector<16x128xf32>,
    %c19 = arith.constant 19 : index
    %c0_14 = arith.constant 0 : index
    %19 = vector.load %arg5[%c19, %c0_14] : memref<36x128xf32, #tpu.memory_space<vmem>>, vector<16x128xf32>
    tpu.vector_store %arg5[%c19, %c0_14], %17 {strides = array<i32>} : memref<36x128xf32, #tpu.memory_space<vmem>>, vector<16x128xf32>,
    %c0_15 = arith.constant 0 : index
    %c0_16 = arith.constant 0 : index
    %20 = vector.load %arg5[%c0_15, %c0_16] : memref<36x128xf32, #tpu.memory_space<vmem>>, vector<36x128xf32>
    %21 = arith.truncf %20 : vector<36x128xf32> to vector<36x128xbf16>
    %cst_17 = arith.constant dense<0.000000e+00> : vector<36x384xf32>
    %22 = tpu.matmul %21, %11, %cst_17 {dimension_numbers = #tpu.dot_dimension_numbers<[1], [0], [0], [1], [0, 0, 1, 1], [], []>} : vector<36x128xbf16>, vector<128x384xbf16>, vector<36x384xf32> -> vector<36x384xf32>
    %23 = vector.extract_strided_slice %22 {offsets = [0, 0], sizes = [16, 128], strides = [1, 1]} : vector<36x384xf32> to vector<16x128xf32>
    %24 = vector.extract_strided_slice %22 {offsets = [1, 128], sizes = [16, 128], strides = [1, 1]} : vector<36x384xf32> to vector<16x128xf32>
    %25 = arith.addf %23, %24 : vector<16x128xf32>
    %26 = vector.extract_strided_slice %22 {offsets = [2, 256], sizes = [16, 128], strides = [1, 1]} : vector<36x384xf32> to vector<16x128xf32>
    %27 = arith.addf %25, %26 : vector<16x128xf32>
    %28 = arith.mulf %27, %7 : vector<16x128xf32>
    %29 = arith.addf %28, %10 : vector<16x128xf32>
    %cst_18 = arith.constant 0.000000e+00 : f32
    %30 = vector.broadcast %cst_18 : f32 to vector<16x128xf32>
    %31 = arith.maximumf %29, %30 : vector<16x128xf32>
    %32 = vector.extract_strided_slice %22 {offsets = [18, 0], sizes = [16, 128], strides = [1, 1]} : vector<36x384xf32> to vector<16x128xf32>
    %33 = vector.extract_strided_slice %22 {offsets = [19, 128], sizes = [16, 128], strides = [1, 1]} : vector<36x384xf32> to vector<16x128xf32>
    %34 = arith.addf %32, %33 : vector<16x128xf32>
    %35 = vector.extract_strided_slice %22 {offsets = [20, 256], sizes = [16, 128], strides = [1, 1]} : vector<36x384xf32> to vector<16x128xf32>
    %36 = arith.addf %34, %35 : vector<16x128xf32>
    %37 = arith.mulf %36, %7 : vector<16x128xf32>
    %38 = arith.addf %37, %10 : vector<16x128xf32>
    %cst_19 = arith.constant 0.000000e+00 : f32
    %39 = vector.broadcast %cst_19 : f32 to vector<16x128xf32>
    %40 = arith.maximumf %38, %39 : vector<16x128xf32>
    %41 = vector.extract_strided_slice %13 {offsets = [0, 0, 0], sizes = [1, 16, 128], strides = [1, 1, 1]} : vector<2x16x128xf32> to vector<1x16x128xf32>
    %42 = vector.shape_cast %41 : vector<1x16x128xf32> to vector<16x128xf32>
    %43 = arith.addf %42, %31 : vector<16x128xf32>
    %44 = vector.extract_strided_slice %13 {offsets = [1, 0, 0], sizes = [1, 16, 128], strides = [1, 1, 1]} : vector<2x16x128xf32> to vector<1x16x128xf32>
    %45 = vector.shape_cast %44 : vector<1x16x128xf32> to vector<16x128xf32>
    %46 = arith.addf %45, %40 : vector<16x128xf32>
    %c1_20 = arith.constant 1 : index
    %c0_21 = arith.constant 0 : index
    %47 = vector.load %arg5[%c1_20, %c0_21] : memref<36x128xf32, #tpu.memory_space<vmem>>, vector<16x128xf32>
    tpu.vector_store %arg5[%c1_20, %c0_21], %43 {strides = array<i32>} : memref<36x128xf32, #tpu.memory_space<vmem>>, vector<16x128xf32>,
    %c19_22 = arith.constant 19 : index
    %c0_23 = arith.constant 0 : index
    %48 = vector.load %arg5[%c19_22, %c0_23] : memref<36x128xf32, #tpu.memory_space<vmem>>, vector<16x128xf32>
    tpu.vector_store %arg5[%c19_22, %c0_23], %46 {strides = array<i32>} : memref<36x128xf32, #tpu.memory_space<vmem>>, vector<16x128xf32>,
    %c0_24 = arith.constant 0 : index
    %c0_25 = arith.constant 0 : index
    %49 = vector.load %arg5[%c0_24, %c0_25] : memref<36x128xf32, #tpu.memory_space<vmem>>, vector<36x128xf32>
    %50 = arith.truncf %49 : vector<36x128xf32> to vector<36x128xbf16>
    %cst_26 = arith.constant dense<0.000000e+00> : vector<36x384xf32>
    %51 = tpu.matmul %50, %11, %cst_26 {dimension_numbers = #tpu.dot_dimension_numbers<[1], [0], [0], [1], [0, 0, 1, 1], [], []>} : vector<36x128xbf16>, vector<128x384xbf16>, vector<36x384xf32> -> vector<36x384xf32>
    %52 = vector.extract_strided_slice %51 {offsets = [0, 0], sizes = [16, 128], strides = [1, 1]} : vector<36x384xf32> to vector<16x128xf32>
    %53 = vector.extract_strided_slice %51 {offsets = [1, 128], sizes = [16, 128], strides = [1, 1]} : vector<36x384xf32> to vector<16x128xf32>
    %54 = arith.addf %52, %53 : vector<16x128xf32>
    %55 = vector.extract_strided_slice %51 {offsets = [2, 256], sizes = [16, 128], strides = [1, 1]} : vector<36x384xf32> to vector<16x128xf32>
    %56 = arith.addf %54, %55 : vector<16x128xf32>
    %57 = arith.mulf %56, %7 : vector<16x128xf32>
    %58 = arith.addf %57, %10 : vector<16x128xf32>
    %cst_27 = arith.constant 0.000000e+00 : f32
    %59 = vector.broadcast %cst_27 : f32 to vector<16x128xf32>
    %60 = arith.maximumf %58, %59 : vector<16x128xf32>
    %61 = vector.extract_strided_slice %51 {offsets = [18, 0], sizes = [16, 128], strides = [1, 1]} : vector<36x384xf32> to vector<16x128xf32>
    %62 = vector.extract_strided_slice %51 {offsets = [19, 128], sizes = [16, 128], strides = [1, 1]} : vector<36x384xf32> to vector<16x128xf32>
    %63 = arith.addf %61, %62 : vector<16x128xf32>
    %64 = vector.extract_strided_slice %51 {offsets = [20, 256], sizes = [16, 128], strides = [1, 1]} : vector<36x384xf32> to vector<16x128xf32>
    %65 = arith.addf %63, %64 : vector<16x128xf32>
    %66 = arith.mulf %65, %7 : vector<16x128xf32>
    %67 = arith.addf %66, %10 : vector<16x128xf32>
    %cst_28 = arith.constant 0.000000e+00 : f32
    %68 = vector.broadcast %cst_28 : f32 to vector<16x128xf32>
    %69 = arith.maximumf %67, %68 : vector<16x128xf32>
    %c0_29 = arith.constant 0 : index
    %c0_30 = arith.constant 0 : index
    %c0_31 = arith.constant 0 : index
    %70 = vector.load %arg4[%c0_29, %c0_30, %c0_31] : memref<2x16x128xf32, #tpu.memory_space<vmem>>, vector<1x16x128xf32>
    %71 = vector.shape_cast %70 : vector<1x16x128xf32> to vector<16x128xf32>
    %72 = vector.shape_cast %60 : vector<16x128xf32> to vector<1x16x128xf32>
    tpu.vector_store %arg4[%c0_29, %c0_30, %c0_31], %72 {strides = array<i32>} : memref<2x16x128xf32, #tpu.memory_space<vmem>>, vector<1x16x128xf32>,
    %c1_32 = arith.constant 1 : index
    %c0_33 = arith.constant 0 : index
    %c0_34 = arith.constant 0 : index
    %73 = vector.load %arg4[%c1_32, %c0_33, %c0_34] : memref<2x16x128xf32, #tpu.memory_space<vmem>>, vector<1x16x128xf32>
    %74 = vector.shape_cast %73 : vector<1x16x128xf32> to vector<16x128xf32>
    %75 = vector.shape_cast %69 : vector<16x128xf32> to vector<1x16x128xf32>
    tpu.vector_store %arg4[%c1_32, %c0_33, %c0_34], %75 {strides = array<i32>} : memref<2x16x128xf32, #tpu.memory_space<vmem>>, vector<1x16x128xf32>,
    return
  }
  func.func @transform_0(%arg0: i32) -> (i32, i32, i32) {
    %c0_i32 = arith.constant 0 : i32
    %c0_i32_0 = arith.constant 0 : i32
    %c0_i32_1 = arith.constant 0 : i32
    return %arg0, %c0_i32, %c0_i32_0 : i32, i32, i32
  }
  func.func @transform_1(%arg0: i32) -> (i32, i32) {
    %c0_i32 = arith.constant 0 : i32
    %c0_i32_0 = arith.constant 0 : i32
    %c0_i32_1 = arith.constant 0 : i32
    return %c0_i32, %c0_i32_0 : i32, i32
  }
  func.func @transform_2(%arg0: i32) -> (i32, i32) {
    %c0_i32 = arith.constant 0 : i32
    %c0_i32_0 = arith.constant 0 : i32
    %c0_i32_1 = arith.constant 0 : i32
    return %c0_i32, %c0_i32_0 : i32, i32
  }
  func.func @transform_3(%arg0: i32) -> (i32, i32, i32) {
    %c0_i32 = arith.constant 0 : i32
    %c0_i32_0 = arith.constant 0 : i32
    %c0_i32_1 = arith.constant 0 : i32
    return %arg0, %c0_i32, %c0_i32_0 : i32, i32, i32
  }
}

module attributes {stable_mosaic.version = 11 : i64} {
  func.func @fused_recurrent_kernel(%arg0: i32, %arg1: memref<2x16x128xbf16, #tpu.memory_space<vmem>>, %arg2: memref<128x384xbf16, #tpu.memory_space<vmem>>, %arg3: memref<2x128xf32, #tpu.memory_space<vmem>>, %arg4: memref<2x16x128xf32, #tpu.memory_space<vmem>>, %arg5: memref<36x128xf32, #tpu.memory_space<vmem>>) attributes {dimension_semantics = [#tpu.dimension_semantics<parallel>], iteration_bounds = array<i64: 1>, scalar_prefetch = 0 : i64, scratch_operands = 1 : i64, tpu.core_type = #tpu.core_type<tc>, window_params = [{transform_indices = @transform_0, window_bounds = array<i64: 2, 16, 128>}, {pipeline_mode = #tpu.pipeline_mode<synchronous>, transform_indices = @transform_1, window_bounds = array<i64: 128, 384>}, {pipeline_mode = #tpu.pipeline_mode<synchronous>, transform_indices = @transform_2, window_bounds = array<i64: 2, 128>}, {transform_indices = @transform_3, window_bounds = array<i64: 2, 16, 128>}]} {
    %cst = arith.constant 0.000000e+00 : f32
    %0 = vector.broadcast %cst : f32 to vector<1x128xf32>
    %c0 = arith.constant 0 : index
    %c0_0 = arith.constant 0 : index
    %1 = vector.load %arg5[%c0, %c0_0] : memref<36x128xf32, #tpu.memory_space<vmem>>, vector<1x128xf32>
    tpu.vector_store %arg5[%c0, %c0_0], %0 {strides = array<i32>} : memref<36x128xf32, #tpu.memory_space<vmem>>, vector<1x128xf32>,
    %c17 = arith.constant 17 : index
    %c0_1 = arith.constant 0 : index
    %2 = vector.load %arg5[%c17, %c0_1] : memref<36x128xf32, #tpu.memory_space<vmem>>, vector<1x128xf32>
    tpu.vector_store %arg5[%c17, %c0_1], %0 {strides = array<i32>} : memref<36x128xf32, #tpu.memory_space<vmem>>, vector<1x128xf32>,
    %c18 = arith.constant 18 : index
    %c0_2 = arith.constant 0 : index
    %3 = vector.load %arg5[%c18, %c0_2] : memref<36x128xf32, #tpu.memory_space<vmem>>, vector<1x128xf32>
    tpu.vector_store %arg5[%c18, %c0_2], %0 {strides = array<i32>} : memref<36x128xf32, #tpu.memory_space<vmem>>, vector<1x128xf32>,
    %c35 = arith.constant 35 : index
    %c0_3 = arith.constant 0 : index
    %4 = vector.load %arg5[%c35, %c0_3] : memref<36x128xf32, #tpu.memory_space<vmem>>, vector<1x128xf32>
    tpu.vector_store %arg5[%c35, %c0_3], %0 {strides = array<i32>} : memref<36x128xf32, #tpu.memory_space<vmem>>, vector<1x128xf32>,
    %c0_4 = arith.constant 0 : index
    %c0_5 = arith.constant 0 : index
    %5 = vector.load %arg3[%c0_4, %c0_5] : memref<2x128xf32, #tpu.memory_space<vmem>>, vector<1x128xf32>
    %6 = vector.shape_cast %5 : vector<1x128xf32> to vector<1x128xf32>
    %7 = vector.broadcast %6 : vector<1x128xf32> to vector<16x128xf32>
    %c1 = arith.constant 1 : index
    %c0_6 = arith.constant 0 : index
    %8 = vector.load %arg3[%c1, %c0_6] : memref<2x128xf32, #tpu.memory_space<vmem>>, vector<1x128xf32>
    %9 = vector.shape_cast %8 : vector<1x128xf32> to vector<1x128xf32>
    %10 = vector.broadcast %9 : vector<1x128xf32> to vector<16x128xf32>
    %c0_7 = arith.constant 0 : index
    %c0_8 = arith.constant 0 : index
    %11 = vector.load %arg2[%c0_7, %c0_8] : memref<128x384xbf16, #tpu.memory_space<vmem>>, vector<128x384xbf16>
    %c0_9 = arith.constant 0 : index
    %c0_10 = arith.constant 0 : index
    %c0_11 = arith.constant 0 : index
    %12 = vector.load %arg1[%c0_9, %c0_10, %c0_11] : memref<2x16x128xbf16, #tpu.memory_space<vmem>>, vector<2x16x128xbf16>
    %13 = arith.extf %12 : vector<2x16x128xbf16> to vector<2x16x128xf32>
    %14 = vector.extract_strided_slice %13 {offsets = [0, 0, 0], sizes = [1, 16, 128], strides = [1, 1, 1]} : vector<2x16x128xf32> to vector<1x16x128xf32>
    %15 = vector.shape_cast %14 : vector<1x16x128xf32> to vector<16x128xf32>
    %16 = vector.extract_strided_slice %13 {offsets = [1, 0, 0], sizes = [1, 16, 128], strides = [1, 1, 1]} : vector<2x16x128xf32> to vector<1x16x128xf32>
    %17 = vector.shape_cast %16 : vector<1x16x128xf32> to vector<16x128xf32>
    %c1_12 = arith.constant 1 : index
    %c0_13 = arith.constant 0 : index
    %18 = vector.load %arg5[%c1_12, %c0_13] : memref<36x128xf32, #tpu.memory_space<vmem>>, vector<16x128xf32>
    tpu.vector_store %arg5[%c1_12, %c0_13], %15 {strides = array<i32>} : memref<36x128xf32, #tpu.memory_space<vmem>>, vector<16x128xf32>,
    %c19 = arith.constant 19 : index
    %c0_14 = arith.constant 0 : index
    %19 = vector.load %arg5[%c19, %c0_14] : memref<36x128xf32, #tpu.memory_space<vmem>>, vector<16x128xf32>
    tpu.vector_store %arg5[%c19, %c0_14], %17 {strides = array<i32>} : memref<36x128xf32, #tpu.memory_space<vmem>>, vector<16x128xf32>,
    %c0_15 = arith.constant 0 : index
    %c0_16 = arith.constant 0 : index
    %20 = vector.load %arg5[%c0_15, %c0_16] : memref<36x128xf32, #tpu.memory_space<vmem>>, vector<36x128xf32>
    %21 = arith.truncf %20 : vector<36x128xf32> to vector<36x128xbf16>
    %cst_17 = arith.constant dense<0.000000e+00> : vector<36x384xf32>
    %22 = tpu.matmul %21, %11, %cst_17 {dimension_numbers = #tpu.dot_dimension_numbers<[1], [0], [0], [1], [0, 0, 1, 1], [], []>} : vector<36x128xbf16>, vector<128x384xbf16>, vector<36x384xf32> -> vector<36x384xf32>
    %23 = vector.extract_strided_slice %22 {offsets = [0, 0], sizes = [16, 128], strides = [1, 1]} : vector<36x384xf32> to vector<16x128xf32>
    %24 = vector.extract_strided_slice %22 {offsets = [1, 128], sizes = [16, 128], strides = [1, 1]} : vector<36x384xf32> to vector<16x128xf32>
    %25 = arith.addf %23, %24 : vector<16x128xf32>
    %26 = vector.extract_strided_slice %22 {offsets = [2, 256], sizes = [16, 128], strides = [1, 1]} : vector<36x384xf32> to vector<16x128xf32>
    %27 = arith.addf %25, %26 : vector<16x128xf32>
    %28 = arith.mulf %27, %7 : vector<16x128xf32>
    %29 = arith.addf %28, %10 : vector<16x128xf32>
    %cst_18 = arith.constant 0.000000e+00 : f32
    %30 = vector.broadcast %cst_18 : f32 to vector<16x128xf32>
    %31 = arith.maximumf %29, %30 : vector<16x128xf32>
    %32 = vector.extract_strided_slice %22 {offsets = [18, 0], sizes = [16, 128], strides = [1, 1]} : vector<36x384xf32> to vector<16x128xf32>
    %33 = vector.extract_strided_slice %22 {offsets = [19, 128], sizes = [16, 128], strides = [1, 1]} : vector<36x384xf32> to vector<16x128xf32>
    %34 = arith.addf %32, %33 : vector<16x128xf32>
    %35 = vector.extract_strided_slice %22 {offsets = [20, 256], sizes = [16, 128], strides = [1, 1]} : vector<36x384xf32> to vector<16x128xf32>
    %36 = arith.addf %34, %35 : vector<16x128xf32>
    %37 = arith.mulf %36, %7 : vector<16x128xf32>
    %38 = arith.addf %37, %10 : vector<16x128xf32>
    %cst_19 = arith.constant 0.000000e+00 : f32
    %39 = vector.broadcast %cst_19 : f32 to vector<16x128xf32>
    %40 = arith.maximumf %38, %39 : vector<16x128xf32>
    %41 = vector.extract_strided_slice %13 {offsets = [0, 0, 0], sizes = [1, 16, 128], strides = [1, 1, 1]} : vector<2x16x128xf32> to vector<1x16x128xf32>
    %42 = vector.shape_cast %41 : vector<1x16x128xf32> to vector<16x128xf32>
    %43 = arith.addf %42, %31 : vector<16x128xf32>
    %44 = vector.extract_strided_slice %13 {offsets = [1, 0, 0], sizes = [1, 16, 128], strides = [1, 1, 1]} : vector<2x16x128xf32> to vector<1x16x128xf32>
    %45 = vector.shape_cast %44 : vector<1x16x128xf32> to vector<16x128xf32>
    %46 = arith.addf %45, %40 : vector<16x128xf32>
    %c1_20 = arith.constant 1 : index
    %c0_21 = arith.constant 0 : index
    %47 = vector.load %arg5[%c1_20, %c0_21] : memref<36x128xf32, #tpu.memory_space<vmem>>, vector<16x128xf32>
    tpu.vector_store %arg5[%c1_20, %c0_21], %43 {strides = array<i32>} : memref<36x128xf32, #tpu.memory_space<vmem>>, vector<16x128xf32>,
    %c19_22 = arith.constant 19 : index
    %c0_23 = arith.constant 0 : index
    %48 = vector.load %arg5[%c19_22, %c0_23] : memref<36x128xf32, #tpu.memory_space<vmem>>, vector<16x128xf32>
    tpu.vector_store %arg5[%c19_22, %c0_23], %46 {strides = array<i32>} : memref<36x128xf32, #tpu.memory_space<vmem>>, vector<16x128xf32>,
    %c0_24 = arith.constant 0 : index
    %c0_25 = arith.constant 0 : index
    %49 = vector.load %arg5[%c0_24, %c0_25] : memref<36x128xf32, #tpu.memory_space<vmem>>, vector<36x128xf32>
    %50 = arith.truncf %49 : vector<36x128xf32> to vector<36x128xbf16>
    %cst_26 = arith.constant dense<0.000000e+00> : vector<36x384xf32>
    %51 = tpu.matmul %50, %11, %cst_26 {dimension_numbers = #tpu.dot_dimension_numbers<[1], [0], [0], [1], [0, 0, 1, 1], [], []>} : vector<36x128xbf16>, vector<128x384xbf16>, vector<36x384xf32> -> vector<36x384xf32>
    %52 = vector.extract_strided_slice %51 {offsets = [0, 0], sizes = [16, 128], strides = [1, 1]} : vector<36x384xf32> to vector<16x128xf32>
    %53 = vector.extract_strided_slice %51 {offsets = [1, 128], sizes = [16, 128], strides = [1, 1]} : vector<36x384xf32> to vector<16x128xf32>
    %54 = arith.addf %52, %53 : vector<16x128xf32>
    %55 = vector.extract_strided_slice %51 {offsets = [2, 256], sizes = [16, 128], strides = [1, 1]} : vector<36x384xf32> to vector<16x128xf32>
    %56 = arith.addf %54, %55 : vector<16x128xf32>
    %57 = arith.mulf %56, %7 : vector<16x128xf32>
    %58 = arith.addf %57, %10 : vector<16x128xf32>
    %cst_27 = arith.constant 0.000000e+00 : f32
    %59 = vector.broadcast %cst_27 : f32 to vector<16x128xf32>
    %60 = arith.maximumf %58, %59 : vector<16x128xf32>
    %61 = vector.extract_strided_slice %51 {offsets = [18, 0], sizes = [16, 128], strides = [1, 1]} : vector<36x384xf32> to vector<16x128xf32>
    %62 = vector.extract_strided_slice %51 {offsets = [19, 128], sizes = [16, 128], strides = [1, 1]} : vector<36x384xf32> to vector<16x128xf32>
    %63 = arith.addf %61, %62 : vector<16x128xf32>
    %64 = vector.extract_strided_slice %51 {offsets = [20, 256], sizes = [16, 128], strides = [1, 1]} : vector<36x384xf32> to vector<16x128xf32>
    %65 = arith.addf %63, %64 : vector<16x128xf32>
    %66 = arith.mulf %65, %7 : vector<16x128xf32>
    %67 = arith.addf %66, %10 : vector<16x128xf32>
    %cst_28 = arith.constant 0.000000e+00 : f32
    %68 = vector.broadcast %cst_28 : f32 to vector<16x128xf32>
    %69 = arith.maximumf %67, %68 : vector<16x128xf32>
    %c0_29 = arith.constant 0 : index
    %c0_30 = arith.constant 0 : index
    %c0_31 = arith.constant 0 : index
    %70 = vector.load %arg4[%c0_29, %c0_30, %c0_31] : memref<2x16x128xf32, #tpu.memory_space<vmem>>, vector<1x16x128xf32>
    %71 = vector.shape_cast %70 : vector<1x16x128xf32> to vector<16x128xf32>
    %72 = vector.shape_cast %60 : vector<16x128xf32> to vector<1x16x128xf32>
    tpu.vector_store %arg4[%c0_29, %c0_30, %c0_31], %72 {strides = array<i32>} : memref<2x16x128xf32, #tpu.memory_space<vmem>>, vector<1x16x128xf32>,
    %c1_32 = arith.constant 1 : index
    %c0_33 = arith.constant 0 : index
    %c0_34 = arith.constant 0 : index
    %73 = vector.load %arg4[%c1_32, %c0_33, %c0_34] : memref<2x16x128xf32, #tpu.memory_space<vmem>>, vector<1x16x128xf32>
    %74 = vector.shape_cast %73 : vector<1x16x128xf32> to vector<16x128xf32>
    %75 = vector.shape_cast %69 : vector<16x128xf32> to vector<1x16x128xf32>
    tpu.vector_store %arg4[%c1_32, %c0_33, %c0_34], %75 {strides = array<i32>} : memref<2x16x128xf32, #tpu.memory_space<vmem>>, vector<1x16x128xf32>,
    return
  }
  func.func @transform_0(%arg0: i32) -> (i32, i32, i32) {
    %c0_i32 = arith.constant 0 : i32
    %c0_i32_0 = arith.constant 0 : i32
    %c0_i32_1 = arith.constant 0 : i32
    return %arg0, %c0_i32, %c0_i32_0 : i32, i32, i32
  }
  func.func @transform_1(%arg0: i32) -> (i32, i32) {
    %c0_i32 = arith.constant 0 : i32
    %c0_i32_0 = arith.constant 0 : i32
    %c0_i32_1 = arith.constant 0 : i32
    return %c0_i32, %c0_i32_0 : i32, i32
  }
  func.func @transform_2(%arg0: i32) -> (i32, i32) {
    %c0_i32 = arith.constant 0 : i32
    %c0_i32_0 = arith.constant 0 : i32
    %c0_i32_1 = arith.constant 0 : i32
    return %c0_i32, %c0_i32_0 : i32, i32
  }
  func.func @transform_3(%arg0: i32) -> (i32, i32, i32) {
    %c0_i32 = arith.constant 0 : i32
    %c0_i32_0 = arith.constant 0 : i32
    %c0_i32_1 = arith.constant 0 : i32
    return %arg0, %c0_i32, %c0_i32_0 : i32, i32, i32
  }
}

</mosaic_0001>

<bundles_post_ra>
// kernel: tpu_custom_call.1
= control target key start
LH: loop header
LB: loop body
LE: loop exit
PB: predicated region body
PF: predicated region fallthrough
CT: control target
= control target key end

     0   :  { %8 = vsyncpa [#allocation4], 0  ;;  %s1133_s0 = inlined_call_operand.hbm [shape: bf16[2,16,128], index: 0, kind: input, shape index: {}]   ;;  %s1134_s1 = inlined_call_operand.hbm [shape: bf16[128,384], index: 1, kind: input, shape index: {}]   ;;  %s1135_s2 = inlined_call_operand.vmem [shape: f32[2,128], index: 2, kind: input, shape index: {}]   ;;  %s1136_s3 = inlined_call_operand.hbm [shape: f32[2,16,128], index: 3, kind: output, shape index: {}]  }
   0x1   :  { %9 = vsyncpa [#allocation7], 0 }
   0x2   :  { %10 = vsyncpa [#allocation5], 0  ;;  %s879_s12 = smov [#allocation3]   ;;  %s807_s16 = scalar_lea.hbm %s1133_s0, 256 }
   0x3   :  { %s16_s13 = sshll.u32 %s879_s12, 4  ;;  %p808_p0 = scmp.ne.s32.totalorder %s1133_s0, %s807_s16  ;;  %s17_s13 = int_to_ptr.vmem [resolvable:$true] %s16_s13 }
   0x4   :  { %p811_p1 = scmp.lt.u32.totalorder %s807_s16, %s1133_s0 }
   0x6   :  { %p813_p2 = pnand %p811_p1, %p808_p0 }
   0x8   :  { %816 = shalt.err (!%p813_p2)
}
   0x9   :  { %s817_s21 = scalar_lea.vmem %s17_s13, 256  ;;  %p822_p4 = scmp.lt.s32.totalorder %s17_s13, %s17_s13 }
   0xa   :  { %p818_p3 = scmp.ne.s32.totalorder %s17_s13, %s817_s21  ;;  %p823_p5 = scmp.lt.s32.totalorder %s817_s21, %s817_s21 }
   0xc   :  { %p824_p6 = por %p823_p5, %p822_p4 }
   0xe   :  { %p825_p7 = pnand %p824_p6, %p818_p3 }
  0x10   :  { %828 = shalt.err (!%p825_p7)
}
  0x11   :  { %s880_s22 = smov 64   ;;  %s881_s23 = smov 4  }
  0x12   :  { %22 = dma.hbm_to_vmem [thread:$0]  %s1133_s0, 256, %s17_s13, [#allocation4], %s880_s22, %s880_s22, %s881_s23  }
  0x13   :  { %s882_s26 = smov [#allocation6]   ;;  %s829_s30 = scalar_lea.hbm %s1134_s1, 3072 }
  0x14   :  { %s28_s27 = sshll.u32 %s882_s26, 4  ;;  %p830_p8 = scmp.ne.s32.totalorder %s1134_s1, %s829_s30  ;;  %s29_s27 = int_to_ptr.vmem [resolvable:$true] %s28_s27 }
  0x15   :  { %p833_p9 = scmp.lt.u32.totalorder %s829_s30, %s1134_s1 }
  0x17   :  { %p835_p10 = pnand %p833_p9, %p830_p8 }
  0x19   :  { %838 = shalt.err (!%p835_p10)
}
  0x1a   :  { %s839_s8 = scalar_lea.vmem %s29_s27, 3072  ;;  %p844_p12 = scmp.lt.s32.totalorder %s29_s27, %s29_s27 }
  0x1b   :  { %p840_p11 = scmp.ne.s32.totalorder %s29_s27, %s839_s8  ;;  %p845_p13 = scmp.lt.s32.totalorder %s839_s8, %s839_s8 }
  0x1d   :  { %p846_p0 = por %p845_p13, %p844_p12 }
  0x1f   :  { %p847_p1 = pnand %p846_p0, %p840_p11 }
  0x21   :  { %850 = shalt.err (!%p847_p1)
}
  0x22   :  { %s883_s0 = smov 192   ;;  %s884_s9 = smov 12  }
  0x23   :  { %34 = dma.hbm_to_vmem [thread:$0]  %s1134_s1, 3072, %s29_s27, [#allocation7], %s883_s0, %s883_s0, %s884_s9  }
  0x24   :  { %873 = dma.done.wait [#allocation4], 256  }
  0x25   :  { %874 = vsyncadd [#allocation4], 4294967040 }
  0x26   :  { %875 = dma.done.wait [#allocation7], 3072  }
  0x27   :  { %876 = vsyncadd [#allocation7], 4294964224  ;;  %v885_v0 = vmov 0.0   ;;  %vm886_vm0 = vmmov 0   ;;  %v887_v1 = vmov 0   ;;  %v992_v18 = vld [vmem:[#allocation3] sm:$0xff]  }
  0x28   :  { %707 = vmatprep.subr.bf16.mxu1 %v885_v0  ;;  %44 = vst [vmem:[#allocation2] sm:$0x1] %v885_v0  ;;  %45 = vst [vmem:[#allocation2 + $0x11] sm:$0x1] %v885_v0  ;;  %723 = vmatprep.mubr.msk.bf16.mxu1 %vm886_vm0, %v885_v0  ;;  %v943_v2 = vld [vmem:[#allocation6 + $0x4] ss:$12 sps:$4 sm:$0xff]   ;;  %v678_v20 = vunpack.c.l.bf16 %v992_v18  ;;  %v679_v21 = vunpack.c.h.bf16 %v992_v18 }
  0x29   :  { %46 = vst [vmem:[#allocation2 + $0x12] sm:$0x1] %v885_v0  ;;  %47 = vst [vmem:[#allocation2 + $0x23] sm:$0x1] %v885_v0  ;;  %270 = vmatprep.mubr.bf16.mxu0 %v887_v1  ;;  %v945_v3 = vld [vmem:[#allocation6 + $0x8] ss:$12 sps:$4 sm:$0xff]   ;;  %238 = vmatprep.subr.bf16.mxu0 %v943_v2 }
  0x2a   :  { %v948_v4 = vld [vmem:[#allocation6] ss:$12 sps:$4 sm:$0xff]   ;;  %708 = vmatpush3.bf16.msra.mxu1 %v945_v3  ;;  %v951_v5 = vld [vmem:[#allocation6 + $0x1c] ss:$12 sps:$4 sm:$0xff]   ;;  %v957_v7 = vld [vmem:[#allocation6 + $0x18] ss:$12 sps:$4 sm:$0xff]  }
  0x2b   :  { %239 = vmatpush1.bf16.msra.mxu0 %v948_v4  ;;  %709 = vmatprep.subr.bf16.mxu1 %v885_v0  ;;  %v955_v6 = vld [vmem:[#allocation6 + $0x20] ss:$12 sps:$4 sm:$0xff]   ;;  %v963_v9 = vld [vmem:[#allocation6 + $0x38] ss:$12 sps:$4 sm:$0xff]   ;;  %v967_v10 = vld [vmem:[#allocation6 + $0x30] ss:$12 sps:$4 sm:$0xff]  }
  0x2c   :  { %240 = vmatprep.subr.bf16.mxu0 %v951_v5  ;;  %v960_v8 = vld [vmem:[#allocation6 + $0x34] ss:$12 sps:$4 sm:$0xff]   ;;  %v970_v11 = vld [vmem:[#allocation6 + $0x4c] ss:$12 sps:$4 sm:$0xff]   ;;  %v973_v12 = vld [vmem:[#allocation6 + $0x50] ss:$12 sps:$4 sm:$0xff]  }
  0x2d   :  { %v977_v13 = vld [vmem:[#allocation6 + $0x48] ss:$12 sps:$4 sm:$0xff]   ;;  %v980_v14 = vld [vmem:[#allocation6 + $0x64] ss:$12 sps:$4 sm:$0xff]   ;;  %v987_v16 = vld [vmem:[#allocation6 + $0x60] ss:$12 sps:$4 sm:$0xff]  }
  0x2e   :  { %710 = vmatpush3.bf16.msra.mxu1 %v955_v6  ;;  %v983_v15 = vld [vmem:[#allocation6 + $0x68] ss:$12 sps:$4 sm:$0xff]   ;;  %v995_v19 = vld [vmem:[#allocation6 + $0x80] ss:$12 sps:$4 sm:$0xff]   ;;  %v999_v22 = vld [vmem:[#allocation3 + $0x8] sm:$0xff]   ;;  %98 = vst [vmem:[#allocation2 + $0x1] sm:$0xff] %v678_v20 }
  0x2f   :  { %241 = vmatpush1.bf16.msra.mxu0 %v957_v7  ;;  %711 = vmatprep.subr.bf16.mxu1 %v885_v0  ;;  %v990_v17 = vld [vmem:[#allocation6 + $0x7c] ss:$12 sps:$4 sm:$0xff]   ;;  %v1003_v23 = vld [vmem:[#allocation6 + $0x78] ss:$12 sps:$4 sm:$0xff]   ;;  %v682_v24 = vunpack.c.l.bf16 %v999_v22  ;;  %v683_v25 = vunpack.c.h.bf16 %v999_v22  ;;  %v1008_v26 = vld [vmem:[#allocation6 + $0x94] ss:$12 sps:$4 sm:$0xff]  }
  0x30   :  { %242 = vmatprep.subr.bf16.mxu0 %v960_v8  ;;  %99 = vst [vmem:[#allocation2 + $0x9] sm:$0xff] %v679_v21  ;;  %v801_v27 = vld [vmem:[#allocation6 + $0x98] ss:$12 sps:$4 sm:$0xff]   ;;  %v802_v28 = vld [vmem:[#allocation6 + $0x90] ss:$12 sps:$4 sm:$0xff]   ;;  %vm371_vm1 = vcmask 1045504  }
  0x31   :  { %100 = vst [vmem:[#allocation2 + $0x13] sm:$0xff] %v682_v24  ;;  %101 = vst [vmem:[#allocation2 + $0x1b] sm:$0xff] %v683_v25  ;;  %v803_v29 = vld [vmem:[#allocation6 + $0xac] ss:$12 sps:$4 sm:$0xff]   ;;  %v805_v30 = vld [vmem:[#allocation6 + $0xb0] ss:$12 sps:$4 sm:$0xff]  }
  0x32   :  { %712 = vmatpush3.bf16.msra.mxu1 %v963_v9  ;;  %v806_v31 = vld [vmem:[#allocation6 + $0xa8] ss:$12 sps:$4 sm:$0xff]   ;;  %vm358_vm2 = vcmask 1046528  }
  0x33   :  { %243 = vmatpush1.bf16.msra.mxu0 %v967_v10  ;;  %713 = vmatprep.subr.bf16.mxu1 %v885_v0  ;;  %v1064_v56 = vld [vmem:[%s1135_s2] ss:$0 sm:$0xff]  ;;  %v1069_v63 = vld [vmem:[%s1135_s2 + $0x1] ss:$0 sm:$0xff]  ;;  %s888_s2 = smov [#allocation8]  }
  0x34   :  { %244 = vmatprep.subr.bf16.mxu0 %v970_v11  ;;  %s637_s15 = sshll.u32 %s888_s2, 4  ;;  %s638_s15 = int_to_ptr.vmem [resolvable:$true] %s637_s15 }
  0x35   :  { %v102_v32 = vld [vmem:[#allocation2] sm:$0xff]  ;;  %s851_s16 = scalar_lea.vmem %s638_s15, 512  ;;  %p856_p3 = scmp.lt.s32.totalorder %s638_s15, %s638_s15 }
  0x36   :  { %714 = vmatpush3.bf16.msra.mxu1 %v973_v12  ;;  %p852_p2 = scmp.ne.s32.totalorder %s638_s15, %s851_s16  ;;  %p857_p4 = scmp.lt.s32.totalorder %s851_s16, %s851_s16 }
  0x37   :  { %245 = vmatpush1.bf16.msra.mxu0 %v977_v13  ;;  %715 = vmatprep.subr.bf16.mxu1 %v885_v0  ;;  %v103_v33 = vld [vmem:[#allocation2 + $0x8] sm:$0xff] }
  0x38   :  { %246 = vmatprep.subr.bf16.mxu0 %v980_v14  ;;  %v107_v34 = vpack.c.bf16 %v103_v33, %v102_v32  ;;  %v104_v35 = vld [vmem:[#allocation2 + $0x10] sm:$0xff]  ;;  %v105_v36 = vld [vmem:[#allocation2 + $0x18] sm:$0xff]  ;;  %v106_v38 = vld [vmem:[#allocation2 + $0x20] sm:$0xf]  ;;  %p858_p5 = por %p857_p4, %p856_p3 }
  0x39   :  { %v108_v37 = vpack.c.bf16 %v105_v36, %v104_v35  ;;  %v109_v39 = vpack.c.bf16 %v106_v38, %v106_v38 }
  0x3a   :  { %716 = vmatpush3.bf16.msra.mxu1 %v983_v15  ;;  %p859_p6 = pnand %p858_p5, %p852_p2 }
  0x3b   :  { %247 = vmatpush1.bf16.msra.mxu0 %v987_v16  ;;  %717 = vmatprep.subr.bf16.mxu1 %v885_v0 }
  0x3c   :  { %248 = vmatprep.subr.bf16.mxu0 %v990_v17 }
  0x3e   :  { %718 = vmatpush3.bf16.msra.mxu1 %v995_v19 }
  0x3f   :  { %249 = vmatpush1.bf16.msra.mxu0 %v1003_v23  ;;  %719 = vmatprep.subr.bf16.mxu1 %v885_v0 }
  0x40   :  { %250 = vmatprep.subr.bf16.mxu0 %v1008_v26 }
  0x42   :  { %720 = vmatpush3.bf16.msra.mxu1 %v801_v27 }
  0x43   :  { %251 = vmatpush1.bf16.msra.mxu0 %v802_v28  ;;  %721 = vmatprep.subr.bf16.mxu1 %v885_v0 }
  0x44   :  { %252 = vmatprep.subr.bf16.mxu0 %v803_v29 }
  0x46   :  { %722 = vmatpush3.bf16.msra.mxu1 %v805_v30 }
  0x47   :  { %253 = vmatpush1.bf16.msra.mxu0 %v806_v31  ;;  %735 = vmatprep.subr.bf16.mxu1 %v885_v0 }
  0x48   :  { %446 = vmatprep.subr.bf16.mxu0 %v943_v2 }
  0x49   :  { %724 = vmatmul.mubr.bf16.vlgmr.msra.gmra.mrb[0].mxu1 %v107_v34 }
  0x4a   :  { %271 = vmatmul.mubr.bf16.vlgmr.msra.gmra.mrb[0].mxu0 %v107_v34  ;;  %727 = vmatprep.mubr.msk.bf16.mxu1 %vm886_vm0, %v885_v0 }
  0x4b   :  { %280 = vmatprep.mubr.bf16.mxu0 %v887_v1  ;;  %447 = vmatpush1.bf16.msra.mxu0 %v948_v4 }
  0x4c   :  { %736 = vmatpush3.bf16.msra.mxu1 %v945_v3  ;;  %448 = vmatprep.subr.bf16.mxu0 %v951_v5 }
  0x4d   :  { %737 = vmatprep.subr.bf16.mxu1 %v885_v0 }
  0x4f   :  { %449 = vmatpush1.bf16.msra.mxu0 %v957_v7 }
  0x50   :  { %738 = vmatpush3.bf16.msra.mxu1 %v955_v6  ;;  %450 = vmatprep.subr.bf16.mxu0 %v960_v8 }
  0x51   :  { %728 = vmatmul.mubr.bf16.gmra.mrb[4].mxu1 %v108_v37  ;;  %739 = vmatprep.subr.bf16.mxu1 %v885_v0 }
  0x52   :  { %281 = vmatmul.mubr.bf16.gmra.mrb[4].mxu0 %v108_v37  ;;  %731 = vmatprep.mubr.msk.bf16.mxu1 %vm886_vm0, %v885_v0 }
  0x53   :  { %290 = vmatprep.mubr.bf16.mxu0 %v887_v1  ;;  %451 = vmatpush1.bf16.msra.mxu0 %v967_v10 }
  0x54   :  { %740 = vmatpush3.bf16.msra.mxu1 %v963_v9  ;;  %452 = vmatprep.subr.bf16.mxu0 %v970_v11 }
  0x55   :  { %741 = vmatprep.subr.bf16.mxu1 %v885_v0 }
  0x57   :  { %453 = vmatpush1.bf16.msra.mxu0 %v977_v13 }
  0x58   :  { %742 = vmatpush3.bf16.msra.mxu1 %v973_v12  ;;  %454 = vmatprep.subr.bf16.mxu0 %v980_v14 }
  0x59   :  { %732 = vmatmul.mubr.bf16.gmra.mrb[8].mxu1 %v109_v39  ;;  %743 = vmatprep.subr.bf16.mxu1 %v885_v0 }
  0x5a   :  { %291 = vmatmul.mubr.bf16.gmra.mrb[8].mxu0 %v109_v39  ;;  %751 = vmatprep.mubr.msk.bf16.mxu1 %vm886_vm0, %v885_v0 }
  0x5b   :  { %455 = vmatpush1.bf16.msra.mxu0 %v987_v16  ;;  %478 = vmatprep.mubr.bf16.mxu0 %v887_v1 }
  0x5c   :  { %744 = vmatpush3.bf16.msra.mxu1 %v983_v15  ;;  %456 = vmatprep.subr.bf16.mxu0 %v990_v17 }
  0x5d   :  { %745 = vmatprep.subr.bf16.mxu1 %v885_v0 }
  0x5f   :  { %457 = vmatpush1.bf16.msra.mxu0 %v1003_v23 }
  0x60   :  { %746 = vmatpush3.bf16.msra.mxu1 %v995_v19  ;;  %458 = vmatprep.subr.bf16.mxu0 %v1008_v26 }
  0x61   :  { %747 = vmatprep.subr.bf16.mxu1 %v885_v0 }
  0x63   :  { %459 = vmatpush1.bf16.msra.mxu0 %v802_v28 }
  0x64   :  { %748 = vmatpush3.bf16.msra.mxu1 %v801_v27  ;;  %460 = vmatprep.subr.bf16.mxu0 %v803_v29 }
  0x65   :  { %749 = vmatprep.subr.bf16.mxu1 %v885_v0 }
  0x67   :  { %461 = vmatpush1.bf16.msra.mxu0 %v806_v31 }
  0x68   :  { %750 = vmatpush3.bf16.msra.mxu1 %v805_v30 }
 0x11c   :  { %v333_v40 = vpop.f32.mrb[0].mxu1 }
 0x11d   :  { %v272_v41 = vpop.f32.mrb[0].mxu0  ;;  %v372_v42 = vrot.slane %v333_v40, 2  ;;  %v725_v43 = vpop.f32.mrb[1].mxu1 }
 0x11e   :  { %v274_v44 = vpop.f32.mrb[1].mxu0  ;;  %v336_v45 = vpop.f32.mrb[2].mxu1 }
 0x11f   :  { %v276_v46 = vpop.f32.mrb[2].mxu0  ;;  %v373_v47 = vrot.slane %v336_v45, 2  ;;  %v726_v48 = vpop.f32.mrb[3].mxu1  ;;  %v359_v50 = vrot.slane %v274_v44, 1 }
 0x120   :  { %v278_v49 = vpop.f32.mrb[3].mxu0 }
 0x121   :  { %v374_v51 = vsel %vm371_vm1, %v372_v42, %v373_v47  ;;  %v360_v52 = vrot.slane %v278_v49, 1 }
 0x123   :  { %v361_v53 = vsel %vm358_vm2, %v359_v50, %v360_v52 }
 0x124   :  { %v366_v54 = vadd.f32 %v361_v53, %v272_v41  ;;  %v341_v55 = vpop.f32.mrb[4].mxu1 }
 0x125   :  { %v375_v57 = vrot.slane %v341_v55, 2  ;;  %v282_v58 = vpop.f32.mrb[4].mxu0  ;;  %v729_v59 = vpop.f32.mrb[5].mxu1 }
 0x126   :  { %v379_v60 = vadd.f32 %v374_v51, %v366_v54  ;;  %v284_v61 = vpop.f32.mrb[5].mxu0  ;;  %v344_v62 = vpop.f32.mrb[6].mxu1 }
 0x127   :  { %v376_v2 = vsel %vm371_vm1, %v373_v47, %v375_v57  ;;  %v362_v3 = vrot.slane %v284_v61, 1  ;;  %v286_v4 = vpop.f32.mrb[6].mxu0  ;;  %v401_v5 = vrot.slane %v344_v62, 2  ;;  %v730_v6 = vpop.f32.mrb[7].mxu1 }
 0x128   :  { %v381_v7 = vmul.f32 %v1064_v56, %v379_v60  ;;  %v288_v8 = vpop.f32.mrb[7].mxu0 }
 0x129   :  { %v363_v9 = vsel %vm358_vm2, %v360_v52, %v362_v3  ;;  %v402_v10 = vsel %vm371_vm1, %v375_v57, %v401_v5  ;;  %v389_v11 = vrot.slane %v288_v8, 1 }
 0x12a   :  { %v383_v12 = vadd.f32 %v1069_v63, %v381_v7  ;;  %v367_v13 = vadd.f32 %v363_v9, %v276_v46 }
 0x12b   :  { %v390_v14 = vsel %vm358_vm2, %v362_v3, %v389_v11 }
 0x12c   :  { %v385_v15 = vmax.f32 %v383_v12, 0.0  ;;  %v380_v16 = vadd.f32 %v376_v2, %v367_v13  ;;  %v396_v17 = vadd.f32 %v390_v14, %v282_v58  ;;  %v349_v19 = vpop.f32.mrb[8].mxu1 }
 0x12d   :  { %v403_v23 = vrot.slane %v349_v19, 2  ;;  %v292_v26 = vpop.f32.mrb[8].mxu0  ;;  %v733_v27 = vpop.f32.mrb[9].mxu1 }
 0x12e   :  { %v420_v28 = vadd.f32 %v678_v20, %v385_v15  ;;  %v382_v29 = vmul.f32 %v1064_v56, %v380_v16  ;;  %v408_v30 = vadd.f32 %v402_v10, %v396_v17  ;;  %v294_v31 = vpop.f32.mrb[9].mxu0  ;;  %v352_v32 = vpop.f32.mrb[10].mxu1 }
 0x12f   :  { %v404_v33 = vsel %vm371_vm1, %v401_v5, %v403_v23  ;;  %v391_v34 = vrot.slane %v294_v31, 1  ;;  %v296_v35 = vpop.f32.mrb[10].mxu0  ;;  %v734_v36 = vpop.f32.mrb[11].mxu1 }
 0x130   :  { %434 = vst [vmem:[#allocation2 + $0x1] sm:$0xff] %v420_v28  ;;  %v384_v37 = vadd.f32 %v1069_v63, %v382_v29  ;;  %v411_v38 = vmul.f32 %v1064_v56, %v408_v30  ;;  %v297_v39 = vpop.f32.mrb[11].mxu0 }
 0x131   :  { %v392_v40 = vsel %vm358_vm2, %v389_v11, %v391_v34  ;;  %v398_v41 = vadd.f32 %v391_v34, %v292_v26 }
 0x132   :  { %v386_v20 = vmax.f32 %v384_v37, 0.0  ;;  %v397_v42 = vadd.f32 %v392_v40, %v286_v4  ;;  %v414_v45 = vadd.f32 %v1069_v63, %v411_v38 }
 0x133   :  { %v410_v43 = vadd.f32 %v403_v23, %v398_v41 }
 0x134   :  { %v421_v44 = vadd.f32 %v679_v21, %v386_v20  ;;  %v409_v46 = vadd.f32 %v404_v33, %v397_v42  ;;  %v417_v50 = vmax.f32 %v414_v45, 0.0 }
 0x135   :  { %v413_v47 = vmul.f32 %v1064_v56, %v410_v43 }
 0x136   :  { %435 = vst [vmem:[#allocation2 + $0x9] sm:$0xff] %v421_v44  ;;  %v412_v48 = vmul.f32 %v1064_v56, %v409_v46  ;;  %v425_v55 = vrot.slane %v417_v50, 2 }
 0x137   :  { %v416_v49 = vadd.f32 %v1069_v63, %v413_v47  ;;  %v438_v18 = vld [vmem:[#allocation2] sm:$0xff] }
 0x138   :  { %v415_v51 = vadd.f32 %v1069_v63, %v412_v48 }
 0x139   :  { %v419_v52 = vmax.f32 %v416_v49, 0.0 }
 0x13a   :  { %v418_v53 = vmax.f32 %v415_v51, 0.0 }
 0x13b   :  { %v428_v54 = vrot.slane %v419_v52, 2 }
 0x13c   :  { %v426_v57 = vrot.slane %v418_v53, 2 }
 0x13d   :  { %v439_v21 = vld [vmem:[#allocation2 + $0x8] sm:$0xff] }
 0x13e   :  { %v427_v58 = vsel %vm371_vm1, %v425_v55, %v426_v57  ;;  %v429_v59 = vsel %vm371_vm1, %v426_v57, %v428_v54  ;;  %v443_v60 = vpack.c.bf16 %v439_v21, %v438_v18 }
 0x13f   :  { %v432_v61 = vadd.f32 %v682_v24, %v427_v58  ;;  %v433_v62 = vadd.f32 %v683_v25, %v429_v59 }
 0x140   :  { %479 = vmatmul.mubr.bf16.vlgmr.msra.gmra.mrb[12].mxu0 %v443_v60  ;;  %752 = vmatmul.mubr.bf16.vlgmr.msra.gmra.mrb[12].mxu1 %v443_v60 }
 0x141   :  { %436 = vst [vmem:[#allocation2 + $0x13] sm:$0xff] %v432_v61  ;;  %437 = vst [vmem:[#allocation2 + $0x1b] sm:$0xff] %v433_v62  ;;  %488 = vmatprep.mubr.bf16.mxu0 %v887_v1  ;;  %755 = vmatprep.mubr.msk.bf16.mxu1 %vm886_vm0, %v885_v0 }
 0x148   :  { %v440_v2 = vld [vmem:[#allocation2 + $0x10] sm:$0xff]  ;;  %v441_v3 = vld [vmem:[#allocation2 + $0x18] sm:$0xff]  ;;  %v442_v22 = vld [vmem:[#allocation2 + $0x20] sm:$0xf] }
 0x149   :  { %v444_v4 = vpack.c.bf16 %v441_v3, %v440_v2  ;;  %v445_v24 = vpack.c.bf16 %v442_v22, %v442_v22 }
 0x14b   :  { %489 = vmatmul.mubr.bf16.gmra.mrb[16].mxu0 %v444_v4  ;;  %756 = vmatmul.mubr.bf16.gmra.mrb[16].mxu1 %v444_v4 }
 0x14c   :  { %498 = vmatprep.mubr.bf16.mxu0 %v887_v1  ;;  %759 = vmatprep.mubr.msk.bf16.mxu1 %vm886_vm0, %v885_v0 }
 0x153   :  { %499 = vmatmul.mubr.bf16.gmra.mrb[20].mxu0 %v445_v24  ;;  %760 = vmatmul.mubr.bf16.gmra.mrb[20].mxu1 %v445_v24 }
 0x213   :  { %v480_v25 = vpop.f32.mrb[12].mxu0  ;;  %v541_v5 = vpop.f32.mrb[12].mxu1 }
 0x214   :  { %v482_v6 = vpop.f32.mrb[13].mxu0  ;;  %v753_v7 = vpop.f32.mrb[13].mxu1  ;;  %v578_v10 = vrot.slane %v541_v5, 2 }
 0x215   :  { %v484_v8 = vpop.f32.mrb[14].mxu0  ;;  %v544_v9 = vpop.f32.mrb[14].mxu1  ;;  %v566_v14 = vrot.slane %v482_v6, 1 }
 0x216   :  { %v579_v11 = vrot.slane %v544_v9, 2  ;;  %v486_v12 = vpop.f32.mrb[15].mxu0  ;;  %v754_v13 = vpop.f32.mrb[15].mxu1 }
 0x217   :  { %v567_v15 = vrot.slane %v486_v12, 1 }
 0x218   :  { %v580_v1 = vsel %vm371_vm1, %v578_v10, %v579_v11 }
 0x219   :  { %v568_v0 = vsel %vm358_vm2, %v566_v14, %v567_v15 }
 0x21a   :  { %v573_v16 = vadd.f32 %v568_v0, %v480_v25 }
 0x21c   :  { %v585_v17 = vadd.f32 %v580_v1, %v573_v16 }
 0x21e   :  { %v587_v19 = vmul.f32 %v1064_v56, %v585_v17  ;;  %v490_v23 = vpop.f32.mrb[16].mxu0  ;;  %v549_v26 = vpop.f32.mrb[16].mxu1 }
 0x21f   :  { %v581_v27 = vrot.slane %v549_v26, 2  ;;  %v492_v28 = vpop.f32.mrb[17].mxu0  ;;  %v757_v29 = vpop.f32.mrb[17].mxu1 }
 0x220   :  { %v589_v30 = vadd.f32 %v1069_v63, %v587_v19  ;;  %v569_v31 = vrot.slane %v492_v28, 1  ;;  %v494_v32 = vpop.f32.mrb[18].mxu0  ;;  %v552_v33 = vpop.f32.mrb[18].mxu1 }
 0x221   :  { %v582_v34 = vsel %vm371_vm1, %v579_v11, %v581_v27  ;;  %v607_v35 = vrot.slane %v552_v33, 2  ;;  %v496_v36 = vpop.f32.mrb[19].mxu0  ;;  %v758_v37 = vpop.f32.mrb[19].mxu1 }
 0x222   :  { %v591_v38 = vmax.f32 %v589_v30, 0.0  ;;  %v570_v39 = vsel %vm358_vm2, %v567_v15, %v569_v31  ;;  %v595_v40 = vrot.slane %v496_v36, 1 }
 0x223   :  { %v574_v41 = vadd.f32 %v570_v39, %v484_v8  ;;  %v608_v20 = vsel %vm371_vm1, %v581_v27, %v607_v35 }
 0x224   :  { %626 = vst [vmem:[#allocation8] sm:$0xff] %v591_v38  ;;  %v596_v42 = vsel %vm358_vm2, %v569_v31, %v595_v40 }
 0x225   :  { %v586_v43 = vadd.f32 %v582_v34, %v574_v41  ;;  %v602_v44 = vadd.f32 %v596_v42, %v490_v23 }
 0x226   :  { %v500_v45 = vpop.f32.mrb[20].mxu0  ;;  %v557_v46 = vpop.f32.mrb[20].mxu1 }
 0x227   :  { %v588_v47 = vmul.f32 %v1064_v56, %v586_v43  ;;  %v614_v48 = vadd.f32 %v608_v20, %v602_v44  ;;  %v609_v49 = vrot.slane %v557_v46, 2  ;;  %v502_v50 = vpop.f32.mrb[21].mxu0  ;;  %v761_v51 = vpop.f32.mrb[21].mxu1 }
 0x228   :  { %v597_v52 = vrot.slane %v502_v50, 1  ;;  %v504_v53 = vpop.f32.mrb[22].mxu0  ;;  %v560_v54 = vpop.f32.mrb[22].mxu1 }
 0x229   :  { %v590_v55 = vadd.f32 %v1069_v63, %v588_v47  ;;  %v617_v57 = vmul.f32 %v1064_v56, %v614_v48  ;;  %v610_v18 = vsel %vm371_vm1, %v607_v35, %v609_v49  ;;  %v505_v21 = vpop.f32.mrb[23].mxu0  ;;  %v762_v58 = vpop.f32.mrb[23].mxu1 }
 0x22a   :  { %v598_v59 = vsel %vm358_vm2, %v595_v40, %v597_v52  ;;  %v604_v60 = vadd.f32 %v597_v52, %v500_v45 }
 0x22b   :  { %v592_v61 = vmax.f32 %v590_v55, 0.0  ;;  %v620_v62 = vadd.f32 %v1069_v63, %v617_v57  ;;  %v603_v2 = vadd.f32 %v598_v59, %v494_v32 }
 0x22c   :  { %v616_v3 = vadd.f32 %v609_v49, %v604_v60 }
 0x22d   :  { %627 = vst [vmem:[#allocation8 + $0x8] sm:$0xff] %v592_v61  ;;  %v623_v4 = vmax.f32 %v620_v62, 0.0  ;;  %v615_v22 = vadd.f32 %v610_v18, %v603_v2 }
 0x22e   :  { %v619_v24 = vmul.f32 %v1064_v56, %v616_v3 }
 0x22f   :  { %629 = vst [vmem:[#allocation8 + $0xe] sm:$0xfc] %v623_v4  ;;  %v618_v25 = vmul.f32 %v1064_v56, %v615_v22 }
 0x230   :  { %v622_v5 = vadd.f32 %v1069_v63, %v619_v24 }
 0x231   :  { %v621_v6 = vadd.f32 %v1069_v63, %v618_v25 }
 0x232   :  { %v625_v7 = vmax.f32 %v622_v5, 0.0 }
 0x233   :  { %v624_v8 = vmax.f32 %v621_v6, 0.0 }
 0x234   :  { %631 = vst [vmem:[#allocation8 + $0x1e] sm:$0x3] %v625_v7 }
 0x235   :  { %630 = vst [vmem:[#allocation8 + $0x16] sm:$0xff] %v624_v8 }
 0x236   :  { %862 = shalt.err (!%p859_p6)
}
 0x237   :  { %s863_s19 = scalar_lea.hbm %s1136_s3, 512 }
 0x238   :  { %p864_p7 = scmp.ne.s32.totalorder %s1136_s3, %s863_s19  ;;  %p867_p8 = scmp.lt.u32.totalorder %s863_s19, %s1136_s3 }
 0x23a   :  { %p869_p9 = pnand %p867_p8, %p864_p7 }
 0x23c   :  { %872 = shalt.err (!%p869_p9)
}
 0x23d   :  { %s889_s24 = smov 128   ;;  %s890_s25 = smov 8  }
 0x23e   :  { %643 = dma.vmem_to_hbm [thread:$0]  %s638_s15, 512, %s1136_s3, [#allocation5], %s889_s24, %s889_s24, %s890_s25  }
 0x23f   :  { %877 = dma.done.wait [#allocation5], 512  }
 0x240   :  { %878 = vsyncadd [#allocation5], 4294966784 }
 0x241   :  { %647 = vsyncpa [#allocation4], 1 }
 0x242   :  { %648 = vsyncpa [#allocation7], 1 }
 0x243   :  { %649 = vsyncpa [#allocation5], 1 }

// kernel: tpu_custom_call.1
= control target key start
LH: loop header
LB: loop body
LE: loop exit
PB: predicated region body
PF: predicated region fallthrough
CT: control target
= control target key end

     0   :  { %8 = vsyncpa [#allocation4], 0  ;;  %s1133_s0 = inlined_call_operand.hbm [shape: bf16[2,16,128], index: 0, kind: input, shape index: {}]   ;;  %s1134_s1 = inlined_call_operand.hbm [shape: bf16[128,384], index: 1, kind: input, shape index: {}]   ;;  %s1135_s2 = inlined_call_operand.vmem [shape: f32[2,128], index: 2, kind: input, shape index: {}]   ;;  %s1136_s3 = inlined_call_operand.hbm [shape: f32[2,16,128], index: 3, kind: output, shape index: {}]  }
   0x1   :  { %9 = vsyncpa [#allocation7], 0 }
   0x2   :  { %10 = vsyncpa [#allocation5], 0  ;;  %s879_s12 = smov [#allocation3]   ;;  %s807_s16 = scalar_lea.hbm %s1133_s0, 256 }
   0x3   :  { %s16_s13 = sshll.u32 %s879_s12, 4  ;;  %p808_p0 = scmp.ne.s32.totalorder %s1133_s0, %s807_s16  ;;  %s17_s13 = int_to_ptr.vmem [resolvable:$true] %s16_s13 }
   0x4   :  { %p811_p1 = scmp.lt.u32.totalorder %s807_s16, %s1133_s0 }
   0x6   :  { %p813_p2 = pnand %p811_p1, %p808_p0 }
   0x8   :  { %816 = shalt.err (!%p813_p2)
}
   0x9   :  { %s817_s21 = scalar_lea.vmem %s17_s13, 256  ;;  %p822_p4 = scmp.lt.s32.totalorder %s17_s13, %s17_s13 }
   0xa   :  { %p818_p3 = scmp.ne.s32.totalorder %s17_s13, %s817_s21  ;;  %p823_p5 = scmp.lt.s32.totalorder %s817_s21, %s817_s21 }
   0xc   :  { %p824_p6 = por %p823_p5, %p822_p4 }
   0xe   :  { %p825_p7 = pnand %p824_p6, %p818_p3 }
  0x10   :  { %828 = shalt.err (!%p825_p7)
}
  0x11   :  { %s880_s22 = smov 64   ;;  %s881_s23 = smov 4  }
  0x12   :  { %22 = dma.hbm_to_vmem [thread:$0]  %s1133_s0, 256, %s17_s13, [#allocation4], %s880_s22, %s880_s22, %s881_s23  }
  0x13   :  { %s882_s26 = smov [#allocation6]   ;;  %s829_s30 = scalar_lea.hbm %s1134_s1, 3072 }
  0x14   :  { %s28_s27 = sshll.u32 %s882_s26, 4  ;;  %p830_p8 = scmp.ne.s32.totalorder %s1134_s1, %s829_s30  ;;  %s29_s27 = int_to_ptr.vmem [resolvable:$true] %s28_s27 }
  0x15   :  { %p833_p9 = scmp.lt.u32.totalorder %s829_s30, %s1134_s1 }
  0x17   :  { %p835_p10 = pnand %p833_p9, %p830_p8 }
  0x19   :  { %838 = shalt.err (!%p835_p10)
}
  0x1a   :  { %s839_s8 = scalar_lea.vmem %s29_s27, 3072  ;;  %p844_p12 = scmp.lt.s32.totalorder %s29_s27, %s29_s27 }
  0x1b   :  { %p840_p11 = scmp.ne.s32.totalorder %s29_s27, %s839_s8  ;;  %p845_p13 = scmp.lt.s32.totalorder %s839_s8, %s839_s8 }
  0x1d   :  { %p846_p0 = por %p845_p13, %p844_p12 }
  0x1f   :  { %p847_p1 = pnand %p846_p0, %p840_p11 }
  0x21   :  { %850 = shalt.err (!%p847_p1)
}
  0x22   :  { %s883_s0 = smov 192   ;;  %s884_s9 = smov 12  }
  0x23   :  { %34 = dma.hbm_to_vmem [thread:$0]  %s1134_s1, 3072, %s29_s27, [#allocation7], %s883_s0, %s883_s0, %s884_s9  }
  0x24   :  { %873 = dma.done.wait [#allocation4], 256  }
  0x25   :  { %874 = vsyncadd [#allocation4], 4294967040 }
  0x26   :  { %875 = dma.done.wait [#allocation7], 3072  }
  0x27   :  { %876 = vsyncadd [#allocation7], 4294964224  ;;  %v885_v0 = vmov 0.0   ;;  %vm886_vm0 = vmmov 0   ;;  %v887_v1 = vmov 0   ;;  %v992_v18 = vld [vmem:[#allocation3] sm:$0xff]  }
  0x28   :  { %707 = vmatprep.subr.bf16.mxu1 %v885_v0  ;;  %44 = vst [vmem:[#allocation2] sm:$0x1] %v885_v0  ;;  %45 = vst [vmem:[#allocation2 + $0x11] sm:$0x1] %v885_v0  ;;  %723 = vmatprep.mubr.msk.bf16.mxu1 %vm886_vm0, %v885_v0  ;;  %v943_v2 = vld [vmem:[#allocation6 + $0x4] ss:$12 sps:$4 sm:$0xff]   ;;  %v678_v20 = vunpack.c.l.bf16 %v992_v18  ;;  %v679_v21 = vunpack.c.h.bf16 %v992_v18 }
  0x29   :  { %46 = vst [vmem:[#allocation2 + $0x12] sm:$0x1] %v885_v0  ;;  %47 = vst [vmem:[#allocation2 + $0x23] sm:$0x1] %v885_v0  ;;  %270 = vmatprep.mubr.bf16.mxu0 %v887_v1  ;;  %v945_v3 = vld [vmem:[#allocation6 + $0x8] ss:$12 sps:$4 sm:$0xff]   ;;  %238 = vmatprep.subr.bf16.mxu0 %v943_v2 }
  0x2a   :  { %v948_v4 = vld [vmem:[#allocation6] ss:$12 sps:$4 sm:$0xff]   ;;  %708 = vmatpush3.bf16.msra.mxu1 %v945_v3  ;;  %v951_v5 = vld [vmem:[#allocation6 + $0x1c] ss:$12 sps:$4 sm:$0xff]   ;;  %v957_v7 = vld [vmem:[#allocation6 + $0x18] ss:$12 sps:$4 sm:$0xff]  }
  0x2b   :  { %239 = vmatpush1.bf16.msra.mxu0 %v948_v4  ;;  %709 = vmatprep.subr.bf16.mxu1 %v885_v0  ;;  %v955_v6 = vld [vmem:[#allocation6 + $0x20] ss:$12 sps:$4 sm:$0xff]   ;;  %v963_v9 = vld [vmem:[#allocation6 + $0x38] ss:$12 sps:$4 sm:$0xff]   ;;  %v967_v10 = vld [vmem:[#allocation6 + $0x30] ss:$12 sps:$4 sm:$0xff]  }
  0x2c   :  { %240 = vmatprep.subr.bf16.mxu0 %v951_v5  ;;  %v960_v8 = vld [vmem:[#allocation6 + $0x34] ss:$12 sps:$4 sm:$0xff]   ;;  %v970_v11 = vld [vmem:[#allocation6 + $0x4c] ss:$12 sps:$4 sm:$0xff]   ;;  %v973_v12 = vld [vmem:[#allocation6 + $0x50] ss:$12 sps:$4 sm:$0xff]  }
  0x2d   :  { %v977_v13 = vld [vmem:[#allocation6 + $0x48] ss:$12 sps:$4 sm:$0xff]   ;;  %v980_v14 = vld [vmem:[#allocation6 + $0x64] ss:$12 sps:$4 sm:$0xff]   ;;  %v987_v16 = vld [vmem:[#allocation6 + $0x60] ss:$12 sps:$4 sm:$0xff]  }
  0x2e   :  { %710 = vmatpush3.bf16.msra.mxu1 %v955_v6  ;;  %v983_v15 = vld [vmem:[#allocation6 + $0x68] ss:$12 sps:$4 sm:$0xff]   ;;  %v995_v19 = vld [vmem:[#allocation6 + $0x80] ss:$12 sps:$4 sm:$0xff]   ;;  %v999_v22 = vld [vmem:[#allocation3 + $0x8] sm:$0xff]   ;;  %98 = vst [vmem:[#allocation2 + $0x1] sm:$0xff] %v678_v20 }
  0x2f   :  { %241 = vmatpush1.bf16.msra.mxu0 %v957_v7  ;;  %711 = vmatprep.subr.bf16.mxu1 %v885_v0  ;;  %v990_v17 = vld [vmem:[#allocation6 + $0x7c] ss:$12 sps:$4 sm:$0xff]   ;;  %v1003_v23 = vld [vmem:[#allocation6 + $0x78] ss:$12 sps:$4 sm:$0xff]   ;;  %v682_v24 = vunpack.c.l.bf16 %v999_v22  ;;  %v683_v25 = vunpack.c.h.bf16 %v999_v22  ;;  %v1008_v26 = vld [vmem:[#allocation6 + $0x94] ss:$12 sps:$4 sm:$0xff]  }
  0x30   :  { %242 = vmatprep.subr.bf16.mxu0 %v960_v8  ;;  %99 = vst [vmem:[#allocation2 + $0x9] sm:$0xff] %v679_v21  ;;  %v801_v27 = vld [vmem:[#allocation6 + $0x98] ss:$12 sps:$4 sm:$0xff]   ;;  %v802_v28 = vld [vmem:[#allocation6 + $0x90] ss:$12 sps:$4 sm:$0xff]   ;;  %vm371_vm1 = vcmask 1045504  }
  0x31   :  { %100 = vst [vmem:[#allocation2 + $0x13] sm:$0xff] %v682_v24  ;;  %101 = vst [vmem:[#allocation2 + $0x1b] sm:$0xff] %v683_v25  ;;  %v803_v29 = vld [vmem:[#allocation6 + $0xac] ss:$12 sps:$4 sm:$0xff]   ;;  %v805_v30 = vld [vmem:[#allocation6 + $0xb0] ss:$12 sps:$4 sm:$0xff]  }
  0x32   :  { %712 = vmatpush3.bf16.msra.mxu1 %v963_v9  ;;  %v806_v31 = vld [vmem:[#allocation6 + $0xa8] ss:$12 sps:$4 sm:$0xff]   ;;  %vm358_vm2 = vcmask 1046528  }
  0x33   :  { %243 = vmatpush1.bf16.msra.mxu0 %v967_v10  ;;  %713 = vmatprep.subr.bf16.mxu1 %v885_v0  ;;  %v1064_v56 = vld [vmem:[%s1135_s2] ss:$0 sm:$0xff]  ;;  %v1069_v63 = vld [vmem:[%s1135_s2 + $0x1] ss:$0 sm:$0xff]  ;;  %s888_s2 = smov [#allocation8]  }
  0x34   :  { %244 = vmatprep.subr.bf16.mxu0 %v970_v11  ;;  %s637_s15 = sshll.u32 %s888_s2, 4  ;;  %s638_s15 = int_to_ptr.vmem [resolvable:$true] %s637_s15 }
  0x35   :  { %v102_v32 = vld [vmem:[#allocation2] sm:$0xff]  ;;  %s851_s16 = scalar_lea.vmem %s638_s15, 512  ;;  %p856_p3 = scmp.lt.s32.totalorder %s638_s15, %s638_s15 }
  0x36   :  { %714 = vmatpush3.bf16.msra.mxu1 %v973_v12  ;;  %p852_p2 = scmp.ne.s32.totalorder %s638_s15, %s851_s16  ;;  %p857_p4 = scmp.lt.s32.totalorder %s851_s16, %s851_s16 }
  0x37   :  { %245 = vmatpush1.bf16.msra.mxu0 %v977_v13  ;;  %715 = vmatprep.subr.bf16.mxu1 %v885_v0  ;;  %v103_v33 = vld [vmem:[#allocation2 + $0x8] sm:$0xff] }
  0x38   :  { %246 = vmatprep.subr.bf16.mxu0 %v980_v14  ;;  %v107_v34 = vpack.c.bf16 %v103_v33, %v102_v32  ;;  %v104_v35 = vld [vmem:[#allocation2 + $0x10] sm:$0xff]  ;;  %v105_v36 = vld [vmem:[#allocation2 + $0x18] sm:$0xff]  ;;  %v106_v38 = vld [vmem:[#allocation2 + $0x20] sm:$0xf]  ;;  %p858_p5 = por %p857_p4, %p856_p3 }
  0x39   :  { %v108_v37 = vpack.c.bf16 %v105_v36, %v104_v35  ;;  %v109_v39 = vpack.c.bf16 %v106_v38, %v106_v38 }
  0x3a   :  { %716 = vmatpush3.bf16.msra.mxu1 %v983_v15  ;;  %p859_p6 = pnand %p858_p5, %p852_p2 }
  0x3b   :  { %247 = vmatpush1.bf16.msra.mxu0 %v987_v16  ;;  %717 = vmatprep.subr.bf16.mxu1 %v885_v0 }
  0x3c   :  { %248 = vmatprep.subr.bf16.mxu0 %v990_v17 }
  0x3e   :  { %718 = vmatpush3.bf16.msra.mxu1 %v995_v19 }
  0x3f   :  { %249 = vmatpush1.bf16.msra.mxu0 %v1003_v23  ;;  %719 = vmatprep.subr.bf16.mxu1 %v885_v0 }
  0x40   :  { %250 = vmatprep.subr.bf16.mxu0 %v1008_v26 }
  0x42   :  { %720 = vmatpush3.bf16.msra.mxu1 %v801_v27 }
  0x43   :  { %251 = vmatpush1.bf16.msra.mxu0 %v802_v28  ;;  %721 = vmatprep.subr.bf16.mxu1 %v885_v0 }
  0x44   :  { %252 = vmatprep.subr.bf16.mxu0 %v803_v29 }
  0x46   :  { %722 = vmatpush3.bf16.msra.mxu1 %v805_v30 }
  0x47   :  { %253 = vmatpush1.bf16.msra.mxu0 %v806_v31  ;;  %735 = vmatprep.subr.bf16.mxu1 %v885_v0 }
  0x48   :  { %446 = vmatprep.subr.bf16.mxu0 %v943_v2 }
  0x49   :  { %724 = vmatmul.mubr.bf16.vlgmr.msra.gmra.mrb[0].mxu1 %v107_v34 }
  0x4a   :  { %271 = vmatmul.mubr.bf16.vlgmr.msra.gmra.mrb[0].mxu0 %v107_v34  ;;  %727 = vmatprep.mubr.msk.bf16.mxu1 %vm886_vm0, %v885_v0 }
  0x4b   :  { %280 = vmatprep.mubr.bf16.mxu0 %v887_v1  ;;  %447 = vmatpush1.bf16.msra.mxu0 %v948_v4 }
  0x4c   :  { %736 = vmatpush3.bf16.msra.mxu1 %v945_v3  ;;  %448 = vmatprep.subr.bf16.mxu0 %v951_v5 }
  0x4d   :  { %737 = vmatprep.subr.bf16.mxu1 %v885_v0 }
  0x4f   :  { %449 = vmatpush1.bf16.msra.mxu0 %v957_v7 }
  0x50   :  { %738 = vmatpush3.bf16.msra.mxu1 %v955_v6  ;;  %450 = vmatprep.subr.bf16.mxu0 %v960_v8 }
  0x51   :  { %728 = vmatmul.mubr.bf16.gmra.mrb[4].mxu1 %v108_v37  ;;  %739 = vmatprep.subr.bf16.mxu1 %v885_v0 }
  0x52   :  { %281 = vmatmul.mubr.bf16.gmra.mrb[4].mxu0 %v108_v37  ;;  %731 = vmatprep.mubr.msk.bf16.mxu1 %vm886_vm0, %v885_v0 }
  0x53   :  { %290 = vmatprep.mubr.bf16.mxu0 %v887_v1  ;;  %451 = vmatpush1.bf16.msra.mxu0 %v967_v10 }
  0x54   :  { %740 = vmatpush3.bf16.msra.mxu1 %v963_v9  ;;  %452 = vmatprep.subr.bf16.mxu0 %v970_v11 }
  0x55   :  { %741 = vmatprep.subr.bf16.mxu1 %v885_v0 }
  0x57   :  { %453 = vmatpush1.bf16.msra.mxu0 %v977_v13 }
  0x58   :  { %742 = vmatpush3.bf16.msra.mxu1 %v973_v12  ;;  %454 = vmatprep.subr.bf16.mxu0 %v980_v14 }
  0x59   :  { %732 = vmatmul.mubr.bf16.gmra.mrb[8].mxu1 %v109_v39  ;;  %743 = vmatprep.subr.bf16.mxu1 %v885_v0 }
  0x5a   :  { %291 = vmatmul.mubr.bf16.gmra.mrb[8].mxu0 %v109_v39  ;;  %751 = vmatprep.mubr.msk.bf16.mxu1 %vm886_vm0, %v885_v0 }
  0x5b   :  { %455 = vmatpush1.bf16.msra.mxu0 %v987_v16  ;;  %478 = vmatprep.mubr.bf16.mxu0 %v887_v1 }
  0x5c   :  { %744 = vmatpush3.bf16.msra.mxu1 %v983_v15  ;;  %456 = vmatprep.subr.bf16.mxu0 %v990_v17 }
  0x5d   :  { %745 = vmatprep.subr.bf16.mxu1 %v885_v0 }
  0x5f   :  { %457 = vmatpush1.bf16.msra.mxu0 %v1003_v23 }
  0x60   :  { %746 = vmatpush3.bf16.msra.mxu1 %v995_v19  ;;  %458 = vmatprep.subr.bf16.mxu0 %v1008_v26 }
  0x61   :  { %747 = vmatprep.subr.bf16.mxu1 %v885_v0 }
  0x63   :  { %459 = vmatpush1.bf16.msra.mxu0 %v802_v28 }
  0x64   :  { %748 = vmatpush3.bf16.msra.mxu1 %v801_v27  ;;  %460 = vmatprep.subr.bf16.mxu0 %v803_v29 }
  0x65   :  { %749 = vmatprep.subr.bf16.mxu1 %v885_v0 }
  0x67   :  { %461 = vmatpush1.bf16.msra.mxu0 %v806_v31 }
  0x68   :  { %750 = vmatpush3.bf16.msra.mxu1 %v805_v30 }
 0x11c   :  { %v333_v40 = vpop.f32.mrb[0].mxu1 }
 0x11d   :  { %v272_v41 = vpop.f32.mrb[0].mxu0  ;;  %v372_v42 = vrot.slane %v333_v40, 2  ;;  %v725_v43 = vpop.f32.mrb[1].mxu1 }
 0x11e   :  { %v274_v44 = vpop.f32.mrb[1].mxu0  ;;  %v336_v45 = vpop.f32.mrb[2].mxu1 }
 0x11f   :  { %v276_v46 = vpop.f32.mrb[2].mxu0  ;;  %v373_v47 = vrot.slane %v336_v45, 2  ;;  %v726_v48 = vpop.f32.mrb[3].mxu1  ;;  %v359_v50 = vrot.slane %v274_v44, 1 }
 0x120   :  { %v278_v49 = vpop.f32.mrb[3].mxu0 }
 0x121   :  { %v374_v51 = vsel %vm371_vm1, %v372_v42, %v373_v47  ;;  %v360_v52 = vrot.slane %v278_v49, 1 }
 0x123   :  { %v361_v53 = vsel %vm358_vm2, %v359_v50, %v360_v52 }
 0x124   :  { %v366_v54 = vadd.f32 %v361_v53, %v272_v41  ;;  %v341_v55 = vpop.f32.mrb[4].mxu1 }
 0x125   :  { %v375_v57 = vrot.slane %v341_v55, 2  ;;  %v282_v58 = vpop.f32.mrb[4].mxu0  ;;  %v729_v59 = vpop.f32.mrb[5].mxu1 }
 0x126   :  { %v379_v60 = vadd.f32 %v374_v51, %v366_v54  ;;  %v284_v61 = vpop.f32.mrb[5].mxu0  ;;  %v344_v62 = vpop.f32.mrb[6].mxu1 }
 0x127   :  { %v376_v2 = vsel %vm371_vm1, %v373_v47, %v375_v57  ;;  %v362_v3 = vrot.slane %v284_v61, 1  ;;  %v286_v4 = vpop.f32.mrb[6].mxu0  ;;  %v401_v5 = vrot.slane %v344_v62, 2  ;;  %v730_v6 = vpop.f32.mrb[7].mxu1 }
 0x128   :  { %v381_v7 = vmul.f32 %v1064_v56, %v379_v60  ;;  %v288_v8 = vpop.f32.mrb[7].mxu0 }
 0x129   :  { %v363_v9 = vsel %vm358_vm2, %v360_v52, %v362_v3  ;;  %v402_v10 = vsel %vm371_vm1, %v375_v57, %v401_v5  ;;  %v389_v11 = vrot.slane %v288_v8, 1 }
 0x12a   :  { %v383_v12 = vadd.f32 %v1069_v63, %v381_v7  ;;  %v367_v13 = vadd.f32 %v363_v9, %v276_v46 }
 0x12b   :  { %v390_v14 = vsel %vm358_vm2, %v362_v3, %v389_v11 }
 0x12c   :  { %v385_v15 = vmax.f32 %v383_v12, 0.0  ;;  %v380_v16 = vadd.f32 %v376_v2, %v367_v13  ;;  %v396_v17 = vadd.f32 %v390_v14, %v282_v58  ;;  %v349_v19 = vpop.f32.mrb[8].mxu1 }
 0x12d   :  { %v403_v23 = vrot.slane %v349_v19, 2  ;;  %v292_v26 = vpop.f32.mrb[8].mxu0  ;;  %v733_v27 = vpop.f32.mrb[9].mxu1 }
 0x12e   :  { %v420_v28 = vadd.f32 %v678_v20, %v385_v15  ;;  %v382_v29 = vmul.f32 %v1064_v56, %v380_v16  ;;  %v408_v30 = vadd.f32 %v402_v10, %v396_v17  ;;  %v294_v31 = vpop.f32.mrb[9].mxu0  ;;  %v352_v32 = vpop.f32.mrb[10].mxu1 }
 0x12f   :  { %v404_v33 = vsel %vm371_vm1, %v401_v5, %v403_v23  ;;  %v391_v34 = vrot.slane %v294_v31, 1  ;;  %v296_v35 = vpop.f32.mrb[10].mxu0  ;;  %v734_v36 = vpop.f32.mrb[11].mxu1 }
 0x130   :  { %434 = vst [vmem:[#allocation2 + $0x1] sm:$0xff] %v420_v28  ;;  %v384_v37 = vadd.f32 %v1069_v63, %v382_v29  ;;  %v411_v38 = vmul.f32 %v1064_v56, %v408_v30  ;;  %v297_v39 = vpop.f32.mrb[11].mxu0 }
 0x131   :  { %v392_v40 = vsel %vm358_vm2, %v389_v11, %v391_v34  ;;  %v398_v41 = vadd.f32 %v391_v34, %v292_v26 }
 0x132   :  { %v386_v20 = vmax.f32 %v384_v37, 0.0  ;;  %v397_v42 = vadd.f32 %v392_v40, %v286_v4  ;;  %v414_v45 = vadd.f32 %v1069_v63, %v411_v38 }
 0x133   :  { %v410_v43 = vadd.f32 %v403_v23, %v398_v41 }
 0x134   :  { %v421_v44 = vadd.f32 %v679_v21, %v386_v20  ;;  %v409_v46 = vadd.f32 %v404_v33, %v397_v42  ;;  %v417_v50 = vmax.f32 %v414_v45, 0.0 }
 0x135   :  { %v413_v47 = vmul.f32 %v1064_v56, %v410_v43 }
 0x136   :  { %435 = vst [vmem:[#allocation2 + $0x9] sm:$0xff] %v421_v44  ;;  %v412_v48 = vmul.f32 %v1064_v56, %v409_v46  ;;  %v425_v55 = vrot.slane %v417_v50, 2 }
 0x137   :  { %v416_v49 = vadd.f32 %v1069_v63, %v413_v47  ;;  %v438_v18 = vld [vmem:[#allocation2] sm:$0xff] }
 0x138   :  { %v415_v51 = vadd.f32 %v1069_v63, %v412_v48 }
 0x139   :  { %v419_v52 = vmax.f32 %v416_v49, 0.0 }
 0x13a   :  { %v418_v53 = vmax.f32 %v415_v51, 0.0 }
 0x13b   :  { %v428_v54 = vrot.slane %v419_v52, 2 }
 0x13c   :  { %v426_v57 = vrot.slane %v418_v53, 2 }
 0x13d   :  { %v439_v21 = vld [vmem:[#allocation2 + $0x8] sm:$0xff] }
 0x13e   :  { %v427_v58 = vsel %vm371_vm1, %v425_v55, %v426_v57  ;;  %v429_v59 = vsel %vm371_vm1, %v426_v57, %v428_v54  ;;  %v443_v60 = vpack.c.bf16 %v439_v21, %v438_v18 }
 0x13f   :  { %v432_v61 = vadd.f32 %v682_v24, %v427_v58  ;;  %v433_v62 = vadd.f32 %v683_v25, %v429_v59 }
 0x140   :  { %479 = vmatmul.mubr.bf16.vlgmr.msra.gmra.mrb[12].mxu0 %v443_v60  ;;  %752 = vmatmul.mubr.bf16.vlgmr.msra.gmra.mrb[12].mxu1 %v443_v60 }
 0x141   :  { %436 = vst [vmem:[#allocation2 + $0x13] sm:$0xff] %v432_v61  ;;  %437 = vst [vmem:[#allocation2 + $0x1b] sm:$0xff] %v433_v62  ;;  %488 = vmatprep.mubr.bf16.mxu0 %v887_v1  ;;  %755 = vmatprep.mubr.msk.bf16.mxu1 %vm886_vm0, %v885_v0 }
 0x148   :  { %v440_v2 = vld [vmem:[#allocation2 + $0x10] sm:$0xff]  ;;  %v441_v3 = vld [vmem:[#allocation2 + $0x18] sm:$0xff]  ;;  %v442_v22 = vld [vmem:[#allocation2 + $0x20] sm:$0xf] }
 0x149   :  { %v444_v4 = vpack.c.bf16 %v441_v3, %v440_v2  ;;  %v445_v24 = vpack.c.bf16 %v442_v22, %v442_v22 }
 0x14b   :  { %489 = vmatmul.mubr.bf16.gmra.mrb[16].mxu0 %v444_v4  ;;  %756 = vmatmul.mubr.bf16.gmra.mrb[16].mxu1 %v444_v4 }
 0x14c   :  { %498 = vmatprep.mubr.bf16.mxu0 %v887_v1  ;;  %759 = vmatprep.mubr.msk.bf16.mxu1 %vm886_vm0, %v885_v0 }
 0x153   :  { %499 = vmatmul.mubr.bf16.gmra.mrb[20].mxu0 %v445_v24  ;;  %760 = vmatmul.mubr.bf16.gmra.mrb[20].mxu1 %v445_v24 }
 0x213   :  { %v480_v25 = vpop.f32.mrb[12].mxu0  ;;  %v541_v5 = vpop.f32.mrb[12].mxu1 }
 0x214   :  { %v482_v6 = vpop.f32.mrb[13].mxu0  ;;  %v753_v7 = vpop.f32.mrb[13].mxu1  ;;  %v578_v10 = vrot.slane %v541_v5, 2 }
 0x215   :  { %v484_v8 = vpop.f32.mrb[14].mxu0  ;;  %v544_v9 = vpop.f32.mrb[14].mxu1  ;;  %v566_v14 = vrot.slane %v482_v6, 1 }
 0x216   :  { %v579_v11 = vrot.slane %v544_v9, 2  ;;  %v486_v12 = vpop.f32.mrb[15].mxu0  ;;  %v754_v13 = vpop.f32.mrb[15].mxu1 }
 0x217   :  { %v567_v15 = vrot.slane %v486_v12, 1 }
 0x218   :  { %v580_v1 = vsel %vm371_vm1, %v578_v10, %v579_v11 }
 0x219   :  { %v568_v0 = vsel %vm358_vm2, %v566_v14, %v567_v15 }
 0x21a   :  { %v573_v16 = vadd.f32 %v568_v0, %v480_v25 }
 0x21c   :  { %v585_v17 = vadd.f32 %v580_v1, %v573_v16 }
 0x21e   :  { %v587_v19 = vmul.f32 %v1064_v56, %v585_v17  ;;  %v490_v23 = vpop.f32.mrb[16].mxu0  ;;  %v549_v26 = vpop.f32.mrb[16].mxu1 }
 0x21f   :  { %v581_v27 = vrot.slane %v549_v26, 2  ;;  %v492_v28 = vpop.f32.mrb[17].mxu0  ;;  %v757_v29 = vpop.f32.mrb[17].mxu1 }
 0x220   :  { %v589_v30 = vadd.f32 %v1069_v63, %v587_v19  ;;  %v569_v31 = vrot.slane %v492_v28, 1  ;;  %v494_v32 = vpop.f32.mrb[18].mxu0  ;;  %v552_v33 = vpop.f32.mrb[18].mxu1 }
 0x221   :  { %v582_v34 = vsel %vm371_vm1, %v579_v11, %v581_v27  ;;  %v607_v35 = vrot.slane %v552_v33, 2  ;;  %v496_v36 = vpop.f32.mrb[19].mxu0  ;;  %v758_v37 = vpop.f32.mrb[19].mxu1 }
 0x222   :  { %v591_v38 = vmax.f32 %v589_v30, 0.0  ;;  %v570_v39 = vsel %vm358_vm2, %v567_v15, %v569_v31  ;;  %v595_v40 = vrot.slane %v496_v36, 1 }
 0x223   :  { %v574_v41 = vadd.f32 %v570_v39, %v484_v8  ;;  %v608_v20 = vsel %vm371_vm1, %v581_v27, %v607_v35 }
 0x224   :  { %626 = vst [vmem:[#allocation8] sm:$0xff] %v591_v38  ;;  %v596_v42 = vsel %vm358_vm2, %v569_v31, %v595_v40 }
 0x225   :  { %v586_v43 = vadd.f32 %v582_v34, %v574_v41  ;;  %v602_v44 = vadd.f32 %v596_v42, %v490_v23 }
 0x226   :  { %v500_v45 = vpop.f32.mrb[20].mxu0  ;;  %v557_v46 = vpop.f32.mrb[20].mxu1 }
 0x227   :  { %v588_v47 = vmul.f32 %v1064_v56, %v586_v43  ;;  %v614_v48 = vadd.f32 %v608_v20, %v602_v44  ;;  %v609_v49 = vrot.slane %v557_v46, 2  ;;  %v502_v50 = vpop.f32.mrb[21].mxu0  ;;  %v761_v51 = vpop.f32.mrb[21].mxu1 }
 0x228   :  { %v597_v52 = vrot.slane %v502_v50, 1  ;;  %v504_v53 = vpop.f32.mrb[22].mxu0  ;;  %v560_v54 = vpop.f32.mrb[22].mxu1 }
 0x229   :  { %v590_v55 = vadd.f32 %v1069_v63, %v588_v47  ;;  %v617_v57 = vmul.f32 %v1064_v56, %v614_v48  ;;  %v610_v18 = vsel %vm371_vm1, %v607_v35, %v609_v49  ;;  %v505_v21 = vpop.f32.mrb[23].mxu0  ;;  %v762_v58 = vpop.f32.mrb[23].mxu1 }
 0x22a   :  { %v598_v59 = vsel %vm358_vm2, %v595_v40, %v597_v52  ;;  %v604_v60 = vadd.f32 %v597_v52, %v500_v45 }
 0x22b   :  { %v592_v61 = vmax.f32 %v590_v55, 0.0  ;;  %v620_v62 = vadd.f32 %v1069_v63, %v617_v57  ;;  %v603_v2 = vadd.f32 %v598_v59, %v494_v32 }
 0x22c   :  { %v616_v3 = vadd.f32 %v609_v49, %v604_v60 }
 0x22d   :  { %627 = vst [vmem:[#allocation8 + $0x8] sm:$0xff] %v592_v61  ;;  %v623_v4 = vmax.f32 %v620_v62, 0.0  ;;  %v615_v22 = vadd.f32 %v610_v18, %v603_v2 }
 0x22e   :  { %v619_v24 = vmul.f32 %v1064_v56, %v616_v3 }
 0x22f   :  { %629 = vst [vmem:[#allocation8 + $0xe] sm:$0xfc] %v623_v4  ;;  %v618_v25 = vmul.f32 %v1064_v56, %v615_v22 }
 0x230   :  { %v622_v5 = vadd.f32 %v1069_v63, %v619_v24 }
 0x231   :  { %v621_v6 = vadd.f32 %v1069_v63, %v618_v25 }
 0x232   :  { %v625_v7 = vmax.f32 %v622_v5, 0.0 }
 0x233   :  { %v624_v8 = vmax.f32 %v621_v6, 0.0 }
 0x234   :  { %631 = vst [vmem:[#allocation8 + $0x1e] sm:$0x3] %v625_v7 }
 0x235   :  { %630 = vst [vmem:[#allocation8 + $0x16] sm:$0xff] %v624_v8 }
 0x236   :  { %862 = shalt.err (!%p859_p6)
}
 0x237   :  { %s863_s19 = scalar_lea.hbm %s1136_s3, 512 }
 0x238   :  { %p864_p7 = scmp.ne.s32.totalorder %s1136_s3, %s863_s19  ;;  %p867_p8 = scmp.lt.u32.totalorder %s863_s19, %s1136_s3 }
 0x23a   :  { %p869_p9 = pnand %p867_p8, %p864_p7 }
 0x23c   :  { %872 = shalt.err (!%p869_p9)
}
 0x23d   :  { %s889_s24 = smov 128   ;;  %s890_s25 = smov 8  }
 0x23e   :  { %643 = dma.vmem_to_hbm [thread:$0]  %s638_s15, 512, %s1136_s3, [#allocation5], %s889_s24, %s889_s24, %s890_s25  }
 0x23f   :  { %877 = dma.done.wait [#allocation5], 512  }
 0x240   :  { %878 = vsyncadd [#allocation5], 4294966784 }
 0x241   :  { %647 = vsyncpa [#allocation4], 1 }
 0x242   :  { %648 = vsyncpa [#allocation7], 1 }
 0x243   :  { %649 = vsyncpa [#allocation5], 1 }

</bundles_post_ra>
